<compile_context>
chip_gen: v7x
topology: tpu7x:2x2x1
jax: 0.10.0
libtpu: 0.0.40
codegen_flags: <defaults>
</compile_context>

<pallas_src>
import functools

import jax
import jax.numpy as jnp
from jax import lax
from jax.experimental import pallas as pl
from jax.experimental.pallas import tpu as pltpu


_SUBLANES = 8                # f32 sublane count; batch padded to a multiple of this
_MXU_DTYPE = jnp.bfloat16    # matmul operand dtype (accumulation stays f32)
_UNROLL_DIAGS = 64           # fully unroll the diagonal loop up to this many steps
_FORI_UNROLL = 8             # partial unroll for longer (rolled) diagonal loops


# ---------------------------------------------------------------------------
# Fused Pallas kernel
# ---------------------------------------------------------------------------
def _fused_lstm_kernel(x_ref, w_ih0_ref, w_big_ref, b_big_ref,
                       w1_ref, b1_ref, w2_ref, b2_ref, out_ref,
                       h_scr, c_scr, xproj_scr,
                       *, num_layers, hidden_size, seq_tile, batch_block):
    """Wavefront multi-layer LSTM + ReLU->fc1->ReLU->fc2 head.

    Per grid step (BB = batch block, TT = seq tile, H = hidden, L = layers):
      x_ref      : (TT*BB, F0)   bf16, rows t*BB + b (time-major inside tile)
      w_ih0_ref  : (F0, 4H)      bf16, layer-0 input weights (i/f/o cols pre-scaled 0.5)
      w_big_ref  : (L*H, L*4H)   bf16, block-bidiagonal [W_hh_l ; W_ih_{l+1}]
      b_big_ref  : (1, L*4H)     f32, concat of per-layer biases (i/f/o pre-scaled 0.5)
      out_ref    : (BB, O)       f32, written on the last seq tile only
      h_scr/c_scr: (BB, L*H)     f32 carries (packed over layers), persist across tiles
      xproj_scr  : (TT*BB, 4H)   f32 hoisted layer-0 input projection
    """
    H, TT, BB, L = hidden_size, seq_tile, batch_block, num_layers
    G = 4 * H

    t_idx = pl.program_id(1)

    @pl.when(t_idx == 0)
    def _init():
        # NOTE: padded batch rows develop nonzero h/c (gates = bias only); they
        # never mix with real rows and are sliced off in the wrapper, so a
        # batch-parallel split must never reduce across the batch dimension.
        h_scr[...] = jnp.zeros_like(h_scr)
        c_scr[...] = jnp.zeros_like(c_scr)

    # Hoisted layer-0 input projection: one big MXU matmul per tile.
    xproj_scr[...] = jnp.dot(x_ref[...], w_ih0_ref[...],
                             preferred_element_type=jnp.float32)

    # Hoisted sigmoid-via-tanh fix-up: act = tanh(pre) * scale + shift.
    # (The 0.5 pre-scale of the i/f/o columns is already folded into the weights.)
    lane = lax.broadcasted_iota(jnp.int32, (BB, G), 1)
    is_g = (lane >= 2 * H) & (lane < 3 * H)
    act_scale = jnp.where(is_g, 1.0, 0.5).astype(jnp.float32)
    act_shift = jnp.where(is_g, 0.0, 0.5).astype(jnp.float32)

    w_big = w_big_ref[...]
    b_big = b_big_ref[...]

    def diagonal(d, *, unrolled):
        # Wavefront step: layer l advances to t = d - l.  One fused matmul
        # against the packed state slab gives every layer's recurrent term.
        s = h_scr[...]                                           # (BB, L*H) f32
        gates = jnp.dot(s.astype(w_big.dtype), w_big,
                        preferred_element_type=jnp.float32) + b_big   # (BB, L*4H)
        if unrolled:
            xp = xproj_scr[pl.ds(d * BB, BB), :] if d < TT else None
        else:
            d_x = jnp.minimum(d, TT - 1)          # clamp: no OOB read in cool-down
            xp = xproj_scr[pl.ds(pl.multiple_of(d_x * BB, BB), BB), :]

        for l in range(L):
            if unrolled and not (l <= d < TT + l):
                continue                          # wavefront bubble: skip entirely
            pre = gates[:, l * G:(l + 1) * G]
            if l == 0:
                pre = pre + xp
            act = jnp.tanh(pre) * act_scale + act_shift          # single EUP pass
            i_g = act[:, 0 * H:1 * H]
            f_g = act[:, 1 * H:2 * H]
            g_g = act[:, 2 * H:3 * H]
            o_g = act[:, 3 * H:4 * H]
            c_new = f_g * c_scr[:, l * H:(l + 1) * H] + i_g * g_g
            h_new = o_g * jnp.tanh(c_new)
            if unrolled:
                c_scr[:, l * H:(l + 1) * H] = c_new
                h_scr[:, l * H:(l + 1) * H] = h_new
            else:
                valid = (d >= l) & (d < TT + l)

                @pl.when(valid)
                def _store(c_new=c_new, h_new=h_new, l=l):
                    c_scr[:, l * H:(l + 1) * H] = c_new
                    h_scr[:, l * H:(l + 1) * H] = h_new

    n_diag = TT + L - 1
    if n_diag <= _UNROLL_DIAGS:
        for d in range(n_diag):                   # full unroll: LLO visibility
            diagonal(d, unrolled=True)
    else:
        def body(d, carry):
            diagonal(d, unrolled=False)
            return carry
        lax.fori_loop(0, n_diag, body, 0, unroll=_FORI_UNROLL)

    # Head on the last layer's final hidden state.  The constant-index output
    # block stays VMEM-resident across the seq axis and is written back only
    # after its last tile, so earlier tiles never touch it.
    @pl.when(t_idx == pl.num_programs(1) - 1)
    def _head():
        hn = jnp.maximum(h_scr[:, (L - 1) * H:L * H], 0.0)
        y = jnp.dot(hn, w1_ref[...], preferred_element_type=jnp.float32) + b1_ref[...]
        y = jnp.maximum(y, 0.0)
        z = jnp.dot(y, w2_ref[...], preferred_element_type=jnp.float32) + b2_ref[...]
        out_ref[...] = z.astype(out_ref.dtype)


# ---------------------------------------------------------------------------
# Wrapper
# ---------------------------------------------------------------------------
def _round_up(x, m):
    return (x + m - 1) // m * m


def _vmem_capacity_bytes():
    try:
        cap = getattr(pltpu.get_tpu_info(), "vmem_capacity_bytes", None)
        if cap:
            return int(cap)
    except Exception:
        pass
    return 64 * 1024 * 1024        # conservative default: v7x per-TC VMEM


def _choose_seq_tile(seq_len, requested, bb, f0, hidden, vmem_budget):
    """Largest divisor of T whose streaming scratch fits the VMEM budget."""
    if requested is not None:
        if seq_len % requested != 0:
            raise ValueError(f"seq_tile={requested} must divide T={seq_len}")
        return requested
    # Per-timestep VMEM: double-buffered bf16 x tile + f32 hoisted projection.
    per_step = bb * (2 * 2 * f0 + 4 * 4 * hidden)
    cap = max(1, vmem_budget // per_step)
    tile = 1
    for d in range(1, min(seq_len, cap) + 1):
        if seq_len % d == 0:
            tile = d
    return tile


def _scale_cols(h):
    # 0.5 on i/f/o gate columns (sigmoid-via-tanh folding), 1.0 on g columns.
    lane = jnp.arange(4 * h)
    return jnp.where((lane >= 2 * h) & (lane < 3 * h), 1.0, 0.5).astype(jnp.float32)


@functools.partial(jax.jit, static_argnames=("seq_tile", "batch_block"))
def lstm_forward(params, x_btf, seq_tile=None, batch_block=None):
    """Forward pass matching the PyTorch module.

    x_btf : (B, T, input_size), batch_first like nn.LSTM(batch_first=True).
    Returns (B, output_size).
    """
    B, T, F0 = x_btf.shape
    layers = params["lstm"]
    L = len(layers)
    H = layers[0]["w_hh_t"].shape[0]
    O = params["fc2"]["w_t"].shape[1]
    G = 4 * H

    BP = _round_up(max(B, _SUBLANES), _SUBLANES)   # batch padded to sublane multiple
    if batch_block is None:
        # Leading "parallel" grid axis: lets v7x shard batch blocks across its
        # 2 TensorCores; a single block (size BP) for small batches.
        batch_block = BP // 2 if (BP >= 16 and BP % 16 == 0) else BP
    if BP % batch_block != 0:
        raise ValueError(f"batch_block={batch_block} must divide padded batch {BP}")
    BB = batch_block
    n_bb = BP // BB

    vmem_cap = _vmem_capacity_bytes()
    vmem_limit = max(32 * 2**20, min(vmem_cap - 8 * 2**20, 120 * 2**20))
    TT = _choose_seq_tile(T, seq_tile, BB, F0, H, vmem_limit // 2)
    n_tiles = T // TT

    # ---- kernel-ready weights (sigmoid-via-tanh 0.5 folding + bf16 cast) ----
    sc = _scale_cols(H)                                                   # (4H,)
    w_ih0 = (layers[0]["w_ih_t"].astype(jnp.float32) * sc).astype(_MXU_DTYPE)
    rows = []
    for l in range(L):
        blocks = []
        for m in range(L):
            if m == l:
                blocks.append(layers[l]["w_hh_t"].astype(jnp.float32) * sc)
            elif m == l + 1:
                blocks.append(layers[l + 1]["w_ih_t"].astype(jnp.float32) * sc)
            else:
                blocks.append(jnp.zeros((H, G), jnp.float32))
        rows.append(jnp.concatenate(blocks, axis=1))                      # (H, L*4H)
    w_big = jnp.concatenate(rows, axis=0).astype(_MXU_DTYPE)              # (L*H, L*4H)
    b_big = jnp.concatenate(
        [layers[l]["b"].astype(jnp.float32) * sc for l in range(L)], axis=1)

    w1 = params["fc1"]["w_t"].astype(jnp.float32)       # (H, 128)
    b1 = params["fc1"]["b"].astype(jnp.float32)         # (1, 128)
    w2 = params["fc2"]["w_t"].astype(jnp.float32)       # (128, O)
    b2 = params["fc2"]["b"].astype(jnp.float32)         # (1, O)
    FC1 = w1.shape[1]

    # ---- x: bf16 (half the DMA bytes), time-major, batch padded, repacked to
    # (n_bb, n_tiles, TT*BB, F0) lane/sublane-dense tiles with rows t*BB + b.
    x = jnp.transpose(x_btf, (1, 0, 2)).astype(_MXU_DTYPE)                # (T, B, F0)
    if BP != B:
        x = jnp.pad(x, ((0, 0), (0, BP - B), (0, 0)))
    x = x.reshape(n_tiles, TT, n_bb, BB, F0)
    x = jnp.transpose(x, (2, 0, 1, 3, 4)).reshape(n_bb, n_tiles, TT * BB, F0)

    kernel = functools.partial(
        _fused_lstm_kernel, num_layers=L, hidden_size=H,
        seq_tile=TT, batch_block=BB)

    const = lambda b, t: (0, 0)
    in_specs = [
        pl.BlockSpec((None, None, TT * BB, F0), lambda b, t: (b, t, 0, 0)),  # x tile
        pl.BlockSpec((F0, G), const),            # w_ih layer 0
        pl.BlockSpec((L * H, L * G), const),     # fused block-bidiagonal recurrent weight
        pl.BlockSpec((1, L * G), const),         # fused bias
        pl.BlockSpec((H, FC1), const),           # fc1 weight
        pl.BlockSpec((1, FC1), const),           # fc1 bias
        pl.BlockSpec((FC1, O), const),           # fc2 weight
        pl.BlockSpec((1, O), const),             # fc2 bias
    ]

    out = pl.pallas_call(
        kernel,
        out_shape=jax.ShapeDtypeStruct((BP, O), jnp.float32),
        grid=(n_bb, n_tiles),
        in_specs=in_specs,
        out_specs=pl.BlockSpec((BB, O), lambda b, t: (b, 0)),
        scratch_shapes=[
            pltpu.VMEM((BB, L * H), jnp.float32),       # h carries (packed over layers)
            pltpu.VMEM((BB, L * H), jnp.float32),       # c carries
            pltpu.VMEM((TT * BB, G), jnp.float32),      # hoisted layer-0 projection
        ],
        compiler_params=pltpu.CompilerParams(
            dimension_semantics=("parallel", "arbitrary"),  # batch || ; serial over T
            vmem_limit_bytes=int(vmem_limit),
        ),
    )(x, w_ih0, w_big, b_big, w1, b1, w2, b2)
    return out[:B]


# ---------------------------------------------------------------------------
# Parameters + pure-JAX reference
# ---------------------------------------------------------------------------
def init_params(key, input_size, hidden_size, output_size, num_layers):
    """Deterministic synthetic parameters, PyTorch nn.LSTM-style init.

    Weights are stored PyTorch-semantic (f32, pre-transposed (F_in,4H)/(H,4H));
    the wrapper folds the sigmoid-via-tanh 0.5 scale and casts matmul operands
    to bf16.
    """
    params = {"lstm": []}
    k = 1.0 / jnp.sqrt(hidden_size)
    for layer in range(num_layers):
        f_in = input_size if layer == 0 else hidden_size
        key, k1, k2, k3, k4 = jax.random.split(key, 5)
        w_ih = jax.random.uniform(k1, (4 * hidden_size, f_in), jnp.float32, -k, k)
        w_hh = jax.random.uniform(k2, (4 * hidden_size, hidden_size), jnp.float32, -k, k)
        b_ih = jax.random.uniform(k3, (4 * hidden_size,), jnp.float32, -k, k)
        b_hh = jax.random.uniform(k4, (4 * hidden_size,), jnp.float32, -k, k)
        params["lstm"].append(dict(
            w_ih_t=w_ih.T,                         # (F_in, 4H)
            w_hh_t=w_hh.T,                         # (H, 4H)
            b=(b_ih + b_hh)[None, :],              # (1, 4H)
        ))
    kv1 = 1.0 / jnp.sqrt(hidden_size)
    key, k1, k2 = jax.random.split(key, 3)
    w1 = jax.random.uniform(k1, (128, hidden_size), jnp.float32, -kv1, kv1)
    b1 = jax.random.uniform(k2, (128,), jnp.float32, -kv1, kv1)
    kv2 = 1.0 / jnp.sqrt(128.0)
    key, k1, k2 = jax.random.split(key, 3)
    w2 = jax.random.uniform(k1, (output_size, 128), jnp.float32, -kv2, kv2)
    b2 = jax.random.uniform(k2, (output_size,), jnp.float32, -kv2, kv2)
    params["fc1"] = dict(w_t=w1.T, b=b1[None, :])            # (H, 128), (1, 128)
    params["fc2"] = dict(w_t=w2.T, b=b2[None, :])            # (128, O), (1, O)
    return params


def lstm_forward_reference(params, x_btf):
    """Pure-JAX (XLA) reference mirroring torch.nn.LSTM + head semantics."""
    x = jnp.transpose(x_btf, (1, 0, 2)).astype(jnp.float32)   # (T, B, F)
    T, B, _ = x.shape
    for lp in params["lstm"]:
        w_ih = lp["w_ih_t"].astype(jnp.float32)
        w_hh = lp["w_hh_t"].astype(jnp.float32)
        b = lp["b"].astype(jnp.float32)
        H = w_hh.shape[0]
        h = jnp.zeros((B, H), jnp.float32)
        c = jnp.zeros((B, H), jnp.float32)
        hs = []
        for t in range(T):
            gates = x[t] @ w_ih + h @ w_hh + b
            i = jax.nn.sigmoid(gates[:, 0 * H:1 * H])
            f = jax.nn.sigmoid(gates[:, 1 * H:2 * H])
            g = jnp.tanh(gates[:, 2 * H:3 * H])
            o = jax.nn.sigmoid(gates[:, 3 * H:4 * H])
            c = f * c + i * g
            h = o * jnp.tanh(c)
            hs.append(h)
        x = jnp.stack(hs)
    hn = jnp.maximum(x[-1], 0.0)
    y = jnp.maximum(hn @ params["fc1"]["w_t"] + params["fc1"]["b"], 0.0)
    return y @ params["fc2"]["w_t"] + params["fc2"]["b"]


# ---------------------------------------------------------------------------
if __name__ == "__main__":
    INPUT_SIZE = 16
    HIDDEN_SIZE = 32
    OUTPUT_SIZE = 10
    NUM_LAYERS = 2
    BATCH = 2
    SEQ = 8

    key = jax.random.PRNGKey(0)
    kp, kx, kx2 = jax.random.split(key, 3)
    params = init_params(kp, INPUT_SIZE, HIDDEN_SIZE, OUTPUT_SIZE, NUM_LAYERS)
    x = jax.random.normal(kx, (BATCH, SEQ, INPUT_SIZE), jnp.float32)
    ref = lstm_forward_reference(params, x)

    # 1) default: VMEM-budget tile -> single seq tile, fully unrolled wavefront.
    out = lstm_forward(params, x)
    jax.block_until_ready(out)
    assert out.shape == (BATCH, OUTPUT_SIZE), out.shape
    assert bool(jnp.all(jnp.isfinite(out)))
    assert jnp.allclose(out, ref, atol=5e-2, rtol=5e-2), (out, ref)

    # 2) forced seq_tile=4 -> exercises the cross-tile h/c carry path.
    out_tiled = lstm_forward(params, x, seq_tile=4)
    jax.block_until_ready(out_tiled)
    assert jnp.allclose(out_tiled, ref, atol=5e-2, rtol=5e-2), (out_tiled, ref)

    # 3) longer sequence -> exercises the rolled fori_loop(unroll=8) diagonal path.
    SEQ_LONG = 72
    x_long = jax.random.normal(kx2, (BATCH, SEQ_LONG, INPUT_SIZE), jnp.float32)
    out_long = lstm_forward(params, x_long)
    jax.block_until_ready(out_long)
    ref_long = lstm_forward_reference(params, x_long)
    assert jnp.allclose(out_long, ref_long, atol=5e-2, rtol=5e-2), (out_long, ref_long)

    print("KERNEL_OK")
</pallas_src>

<mosaic_0001>
module attributes {stable_mosaic.version = 11 : i64} {
  func.func @_fused_lstm_kernel(%arg0: i32, %arg1: i32, %arg2: memref<1x1x64x16xbf16, #tpu.memory_space<vmem>>, %arg3: memref<16x128xbf16, #tpu.memory_space<vmem>>, %arg4: memref<64x256xbf16, #tpu.memory_space<vmem>>, %arg5: memref<1x256xf32, #tpu.memory_space<vmem>>, %arg6: memref<32x128xf32, #tpu.memory_space<vmem>>, %arg7: memref<1x128xf32, #tpu.memory_space<vmem>>, %arg8: memref<128x10xf32, #tpu.memory_space<vmem>>, %arg9: memref<1x10xf32, #tpu.memory_space<vmem>>, %arg10: memref<8x10xf32, #tpu.memory_space<vmem>>, %arg11: memref<8x64xf32, #tpu.memory_space<vmem>>, %arg12: memref<8x64xf32, #tpu.memory_space<vmem>>, %arg13: memref<64x128xf32, #tpu.memory_space<vmem>>) attributes {dimension_semantics = [#tpu.dimension_semantics<parallel>, #tpu.dimension_semantics<arbitrary>], iteration_bounds = array<i64: 1, 1>, scalar_prefetch = 0 : i64, scratch_operands = 3 : i64, tpu.core_type = #tpu.core_type<tc>, window_params = [{transform_indices = @transform_0, window_bounds = array<i64: 1, 1, 64, 16>}, {pipeline_mode = #tpu.pipeline_mode<synchronous>, transform_indices = @transform_1, window_bounds = array<i64: 16, 128>}, {pipeline_mode = #tpu.pipeline_mode<synchronous>, transform_indices = @transform_2, window_bounds = array<i64: 64, 256>}, {pipeline_mode = #tpu.pipeline_mode<synchronous>, transform_indices = @transform_3, window_bounds = array<i64: 1, 256>}, {pipeline_mode = #tpu.pipeline_mode<synchronous>, transform_indices = @transform_4, window_bounds = array<i64: 32, 128>}, {pipeline_mode = #tpu.pipeline_mode<synchronous>, transform_indices = @transform_5, window_bounds = array<i64: 1, 128>}, {pipeline_mode = #tpu.pipeline_mode<synchronous>, transform_indices = @transform_6, window_bounds = array<i64: 128, 10>}, {pipeline_mode = #tpu.pipeline_mode<synchronous>, transform_indices = @transform_7, window_bounds = array<i64: 1, 10>}, {transform_indices = @transform_8, window_bounds = array<i64: 8, 10>}]} {
    %c0_i32 = arith.constant 0 : i32
    %0 = arith.cmpi eq, %arg1, %c0_i32 : i32
    %1 = arith.extui %0 : i1 to i32
    %c0_i32_0 = arith.constant 0 : i32
    %2 = arith.cmpi ne, %1, %c0_i32_0 : i32
    scf.if %2 {
      %cst_150 = arith.constant 0.000000e+00 : f32
      %342 = vector.broadcast %cst_150 : f32 to vector<8x64xf32>
      %c0_151 = arith.constant 0 : index
      %c0_152 = arith.constant 0 : index
      %343 = vector.load %arg11[%c0_151, %c0_152] : memref<8x64xf32, #tpu.memory_space<vmem>>, vector<8x64xf32>
      tpu.vector_store %arg11[%c0_151, %c0_152], %342 {strides = array<i32>} : memref<8x64xf32, #tpu.memory_space<vmem>>, vector<8x64xf32>,
      %cst_153 = arith.constant 0.000000e+00 : f32
      %344 = vector.broadcast %cst_153 : f32 to vector<8x64xf32>
      %c0_154 = arith.constant 0 : index
      %c0_155 = arith.constant 0 : index
      %345 = vector.load %arg12[%c0_154, %c0_155] : memref<8x64xf32, #tpu.memory_space<vmem>>, vector<8x64xf32>
      tpu.vector_store %arg12[%c0_154, %c0_155], %344 {strides = array<i32>} : memref<8x64xf32, #tpu.memory_space<vmem>>, vector<8x64xf32>,
    } else {
    }
    %c0 = arith.constant 0 : index
    %c0_1 = arith.constant 0 : index
    %c0_2 = arith.constant 0 : index
    %c0_3 = arith.constant 0 : index
    %3 = vector.load %arg2[%c0, %c0_1, %c0_2, %c0_3] : memref<1x1x64x16xbf16, #tpu.memory_space<vmem>>, vector<1x1x64x16xbf16>
    %4 = vector.shape_cast %3 : vector<1x1x64x16xbf16> to vector<64x16xbf16>
    %c0_4 = arith.constant 0 : index
    %c0_5 = arith.constant 0 : index
    %5 = vector.load %arg3[%c0_4, %c0_5] : memref<16x128xbf16, #tpu.memory_space<vmem>>, vector<16x128xbf16>
    %cst = arith.constant dense<0.000000e+00> : vector<64x128xf32>
    %6 = tpu.matmul %4, %5, %cst {dimension_numbers = #tpu.dot_dimension_numbers<[1], [0], [0], [1], [0, 0, 1, 1], [], []>} : vector<64x16xbf16>, vector<16x128xbf16>, vector<64x128xf32> -> vector<64x128xf32>
    %c0_6 = arith.constant 0 : index
    %c0_7 = arith.constant 0 : index
    %7 = vector.load %arg13[%c0_6, %c0_7] : memref<64x128xf32, #tpu.memory_space<vmem>>, vector<64x128xf32>
    tpu.vector_store %arg13[%c0_6, %c0_7], %6 {strides = array<i32>} : memref<64x128xf32, #tpu.memory_space<vmem>>, vector<64x128xf32>,
    %8 = tpu.iota {dimensions = array<i32: 1>} : vector<8x128xi32>
    %c64_i32 = arith.constant 64 : i32
    %9 = vector.broadcast %c64_i32 : i32 to vector<8x128xi32>
    %10 = arith.cmpi sge, %8, %9 : vector<8x128xi32>
    %c96_i32 = arith.constant 96 : i32
    %11 = vector.broadcast %c96_i32 : i32 to vector<8x128xi32>
    %12 = arith.cmpi slt, %8, %11 : vector<8x128xi32>
    %13 = arith.andi %10, %12 : vector<8x128xi1>
    %cst_8 = arith.constant 1.000000e+00 : f32
    %cst_9 = arith.constant 5.000000e-01 : f32
    %14 = vector.broadcast %cst_8 : f32 to vector<8x128xf32>
    %15 = vector.broadcast %cst_9 : f32 to vector<8x128xf32>
    %16 = arith.select %13, %14, %15 : vector<8x128xi1>, vector<8x128xf32>
    %cst_10 = arith.constant 0.000000e+00 : f32
    %cst_11 = arith.constant 5.000000e-01 : f32
    %17 = vector.broadcast %cst_10 : f32 to vector<8x128xf32>
    %18 = vector.broadcast %cst_11 : f32 to vector<8x128xf32>
    %19 = arith.select %13, %17, %18 : vector<8x128xi1>, vector<8x128xf32>
    %c0_12 = arith.constant 0 : index
    %c0_13 = arith.constant 0 : index
    %20 = vector.load %arg4[%c0_12, %c0_13] : memref<64x256xbf16, #tpu.memory_space<vmem>>, vector<64x256xbf16>
    %c0_14 = arith.constant 0 : index
    %c0_15 = arith.constant 0 : index
    %21 = vector.load %arg5[%c0_14, %c0_15] : memref<1x256xf32, #tpu.memory_space<vmem>>, vector<1x256xf32>
    %c0_16 = arith.constant 0 : index
    %c0_17 = arith.constant 0 : index
    %22 = vector.load %arg11[%c0_16, %c0_17] : memref<8x64xf32, #tpu.memory_space<vmem>>, vector<8x64xf32>
    %23 = arith.truncf %22 : vector<8x64xf32> to vector<8x64xbf16>
    %cst_18 = arith.constant dense<0.000000e+00> : vector<8x256xf32>
    %24 = tpu.matmul %23, %20, %cst_18 {dimension_numbers = #tpu.dot_dimension_numbers<[1], [0], [0], [1], [0, 0, 1, 1], [], []>} : vector<8x64xbf16>, vector<64x256xbf16>, vector<8x256xf32> -> vector<8x256xf32>
    %25 = vector.broadcast %21 : vector<1x256xf32> to vector<8x256xf32>
    %26 = arith.addf %24, %25 : vector<8x256xf32>
    %c0_19 = arith.constant 0 : index
    %c0_20 = arith.constant 0 : index
    %27 = vector.load %arg13[%c0_19, %c0_20] : memref<64x128xf32, #tpu.memory_space<vmem>>, vector<8x128xf32>
    %28 = vector.extract_strided_slice %26 {offsets = [0, 0], sizes = [8, 128], strides = [1, 1]} : vector<8x256xf32> to vector<8x128xf32>
    %29 = arith.addf %28, %27 : vector<8x128xf32>
    %30 = math.tanh %29 : vector<8x128xf32>
    %31 = arith.mulf %30, %16 : vector<8x128xf32>
    %32 = arith.addf %31, %19 : vector<8x128xf32>
    %33 = vector.extract_strided_slice %32 {offsets = [0, 0], sizes = [8, 32], strides = [1, 1]} : vector<8x128xf32> to vector<8x32xf32>
    %34 = vector.extract_strided_slice %32 {offsets = [0, 32], sizes = [8, 32], strides = [1, 1]} : vector<8x128xf32> to vector<8x32xf32>
    %35 = vector.extract_strided_slice %32 {offsets = [0, 64], sizes = [8, 32], strides = [1, 1]} : vector<8x128xf32> to vector<8x32xf32>
    %36 = vector.extract_strided_slice %32 {offsets = [0, 96], sizes = [8, 32], strides = [1, 1]} : vector<8x128xf32> to vector<8x32xf32>
    %c0_21 = arith.constant 0 : index
    %c0_22 = arith.constant 0 : index
    %37 = vector.load %arg12[%c0_21, %c0_22] : memref<8x64xf32, #tpu.memory_space<vmem>>, vector<8x32xf32>
    %38 = arith.mulf %34, %37 : vector<8x32xf32>
    %39 = arith.mulf %33, %35 : vector<8x32xf32>
    %40 = arith.addf %38, %39 : vector<8x32xf32>
    %41 = math.tanh %40 : vector<8x32xf32>
    %42 = arith.mulf %36, %41 : vector<8x32xf32>
    %c0_23 = arith.constant 0 : index
    %c0_24 = arith.constant 0 : index
    %43 = vector.load %arg12[%c0_23, %c0_24] : memref<8x64xf32, #tpu.memory_space<vmem>>, vector<8x32xf32>
    tpu.vector_store %arg12[%c0_23, %c0_24], %40 {strides = array<i32>} : memref<8x64xf32, #tpu.memory_space<vmem>>, vector<8x32xf32>,
    %c0_25 = arith.constant 0 : index
    %c0_26 = arith.constant 0 : index
    %44 = vector.load %arg11[%c0_25, %c0_26] : memref<8x64xf32, #tpu.memory_space<vmem>>, vector<8x32xf32>
    tpu.vector_store %arg11[%c0_25, %c0_26], %42 {strides = array<i32>} : memref<8x64xf32, #tpu.memory_space<vmem>>, vector<8x32xf32>,
    %c0_27 = arith.constant 0 : index
    %c0_28 = arith.constant 0 : index
    %45 = vector.load %arg11[%c0_27, %c0_28] : memref<8x64xf32, #tpu.memory_space<vmem>>, vector<8x64xf32>
    %46 = arith.truncf %45 : vector<8x64xf32> to vector<8x64xbf16>
    %cst_29 = arith.constant dense<0.000000e+00> : vector<8x256xf32>
    %47 = tpu.matmul %46, %20, %cst_29 {dimension_numbers = #tpu.dot_dimension_numbers<[1], [0], [0], [1], [0, 0, 1, 1], [], []>} : vector<8x64xbf16>, vector<64x256xbf16>, vector<8x256xf32> -> vector<8x256xf32>
    %48 = vector.broadcast %21 : vector<1x256xf32> to vector<8x256xf32>
    %49 = arith.addf %47, %48 : vector<8x256xf32>
    %c8 = arith.constant 8 : index
    %c0_30 = arith.constant 0 : index
    %50 = vector.load %arg13[%c8, %c0_30] : memref<64x128xf32, #tpu.memory_space<vmem>>, vector<8x128xf32>
    %51 = vector.extract_strided_slice %49 {offsets = [0, 0], sizes = [8, 128], strides = [1, 1]} : vector<8x256xf32> to vector<8x128xf32>
    %52 = arith.addf %51, %50 : vector<8x128xf32>
    %53 = math.tanh %52 : vector<8x128xf32>
    %54 = arith.mulf %53, %16 : vector<8x128xf32>
    %55 = arith.addf %54, %19 : vector<8x128xf32>
    %56 = vector.extract_strided_slice %55 {offsets = [0, 0], sizes = [8, 32], strides = [1, 1]} : vector<8x128xf32> to vector<8x32xf32>
    %57 = vector.extract_strided_slice %55 {offsets = [0, 32], sizes = [8, 32], strides = [1, 1]} : vector<8x128xf32> to vector<8x32xf32>
    %58 = vector.extract_strided_slice %55 {offsets = [0, 64], sizes = [8, 32], strides = [1, 1]} : vector<8x128xf32> to vector<8x32xf32>
    %59 = vector.extract_strided_slice %55 {offsets = [0, 96], sizes = [8, 32], strides = [1, 1]} : vector<8x128xf32> to vector<8x32xf32>
    %c0_31 = arith.constant 0 : index
    %c0_32 = arith.constant 0 : index
    %60 = vector.load %arg12[%c0_31, %c0_32] : memref<8x64xf32, #tpu.memory_space<vmem>>, vector<8x32xf32>
    %61 = arith.mulf %57, %60 : vector<8x32xf32>
    %62 = arith.mulf %56, %58 : vector<8x32xf32>
    %63 = arith.addf %61, %62 : vector<8x32xf32>
    %64 = math.tanh %63 : vector<8x32xf32>
    %65 = arith.mulf %59, %64 : vector<8x32xf32>
    %c0_33 = arith.constant 0 : index
    %c0_34 = arith.constant 0 : index
    %66 = vector.load %arg12[%c0_33, %c0_34] : memref<8x64xf32, #tpu.memory_space<vmem>>, vector<8x32xf32>
    tpu.vector_store %arg12[%c0_33, %c0_34], %63 {strides = array<i32>} : memref<8x64xf32, #tpu.memory_space<vmem>>, vector<8x32xf32>,
    %c0_35 = arith.constant 0 : index
    %c0_36 = arith.constant 0 : index
    %67 = vector.load %arg11[%c0_35, %c0_36] : memref<8x64xf32, #tpu.memory_space<vmem>>, vector<8x32xf32>
    tpu.vector_store %arg11[%c0_35, %c0_36], %65 {strides = array<i32>} : memref<8x64xf32, #tpu.memory_space<vmem>>, vector<8x32xf32>,
    %68 = vector.extract_strided_slice %49 {offsets = [0, 128], sizes = [8, 128], strides = [1, 1]} : vector<8x256xf32> to vector<8x128xf32>
    %69 = math.tanh %68 : vector<8x128xf32>
    %70 = arith.mulf %69, %16 : vector<8x128xf32>
    %71 = arith.addf %70, %19 : vector<8x128xf32>
    %72 = vector.extract_strided_slice %71 {offsets = [0, 0], sizes = [8, 32], strides = [1, 1]} : vector<8x128xf32> to vector<8x32xf32>
    %73 = vector.extract_strided_slice %71 {offsets = [0, 32], sizes = [8, 32], strides = [1, 1]} : vector<8x128xf32> to vector<8x32xf32>
    %74 = vector.extract_strided_slice %71 {offsets = [0, 64], sizes = [8, 32], strides = [1, 1]} : vector<8x128xf32> to vector<8x32xf32>
    %75 = vector.extract_strided_slice %71 {offsets = [0, 96], sizes = [8, 32], strides = [1, 1]} : vector<8x128xf32> to vector<8x32xf32>
    %c0_37 = arith.constant 0 : index
    %c32 = arith.constant 32 : index
    %76 = vector.load %arg12[%c0_37, %c32] : memref<8x64xf32, #tpu.memory_space<vmem>>, vector<8x32xf32>
    %77 = arith.mulf %73, %76 : vector<8x32xf32>
    %78 = arith.mulf %72, %74 : vector<8x32xf32>
    %79 = arith.addf %77, %78 : vector<8x32xf32>
    %80 = math.tanh %79 : vector<8x32xf32>
    %81 = arith.mulf %75, %80 : vector<8x32xf32>
    %c0_38 = arith.constant 0 : index
    %c32_39 = arith.constant 32 : index
    %82 = vector.load %arg12[%c0_38, %c32_39] : memref<8x64xf32, #tpu.memory_space<vmem>>, vector<8x32xf32>
    tpu.vector_store %arg12[%c0_38, %c32_39], %79 {strides = array<i32>} : memref<8x64xf32, #tpu.memory_space<vmem>>, vector<8x32xf32>,
    %c0_40 = arith.constant 0 : index
    %c32_41 = arith.constant 32 : index
    %83 = vector.load %arg11[%c0_40, %c32_41] : memref<8x64xf32, #tpu.memory_space<vmem>>, vector<8x32xf32>
    tpu.vector_store %arg11[%c0_40, %c32_41], %81 {strides = array<i32>} : memref<8x64xf32, #tpu.memory_space<vmem>>, vector<8x32xf32>,
    %c0_42 = arith.constant 0 : index
    %c0_43 = arith.constant 0 : index
    %84 = vector.load %arg11[%c0_42, %c0_43] : memref<8x64xf32, #tpu.memory_space<vmem>>, vector<8x64xf32>
    %85 = arith.truncf %84 : vector<8x64xf32> to vector<8x64xbf16>
    %cst_44 = arith.constant dense<0.000000e+00> : vector<8x256xf32>
    %86 = tpu.matmul %85, %20, %cst_44 {dimension_numbers = #tpu.dot_dimension_numbers<[1], [0], [0], [1], [0, 0, 1, 1], [], []>} : vector<8x64xbf16>, vector<64x256xbf16>, vector<8x256xf32> -> vector<8x256xf32>
    %87 = vector.broadcast %21 : vector<1x256xf32> to vector<8x256xf32>
    %88 = arith.addf %86, %87 : vector<8x256xf32>
    %c16 = arith.constant 16 : index
    %c0_45 = arith.constant 0 : index
    %89 = vector.load %arg13[%c16, %c0_45] : memref<64x128xf32, #tpu.memory_space<vmem>>, vector<8x128xf32>
    %90 = vector.extract_strided_slice %88 {offsets = [0, 0], sizes = [8, 128], strides = [1, 1]} : vector<8x256xf32> to vector<8x128xf32>
    %91 = arith.addf %90, %89 : vector<8x128xf32>
    %92 = math.tanh %91 : vector<8x128xf32>
    %93 = arith.mulf %92, %16 : vector<8x128xf32>
    %94 = arith.addf %93, %19 : vector<8x128xf32>
    %95 = vector.extract_strided_slice %94 {offsets = [0, 0], sizes = [8, 32], strides = [1, 1]} : vector<8x128xf32> to vector<8x32xf32>
    %96 = vector.extract_strided_slice %94 {offsets = [0, 32], sizes = [8, 32], strides = [1, 1]} : vector<8x128xf32> to vector<8x32xf32>
    %97 = vector.extract_strided_slice %94 {offsets = [0, 64], sizes = [8, 32], strides = [1, 1]} : vector<8x128xf32> to vector<8x32xf32>
    %98 = vector.extract_strided_slice %94 {offsets = [0, 96], sizes = [8, 32], strides = [1, 1]} : vector<8x128xf32> to vector<8x32xf32>
    %c0_46 = arith.constant 0 : index
    %c0_47 = arith.constant 0 : index
    %99 = vector.load %arg12[%c0_46, %c0_47] : memref<8x64xf32, #tpu.memory_space<vmem>>, vector<8x32xf32>
    %100 = arith.mulf %96, %99 : vector<8x32xf32>
    %101 = arith.mulf %95, %97 : vector<8x32xf32>
    %102 = arith.addf %100, %101 : vector<8x32xf32>
    %103 = math.tanh %102 : vector<8x32xf32>
    %104 = arith.mulf %98, %103 : vector<8x32xf32>
    %c0_48 = arith.constant 0 : index
    %c0_49 = arith.constant 0 : index
    %105 = vector.load %arg12[%c0_48, %c0_49] : memref<8x64xf32, #tpu.memory_space<vmem>>, vector<8x32xf32>
    tpu.vector_store %arg12[%c0_48, %c0_49], %102 {strides = array<i32>} : memref<8x64xf32, #tpu.memory_space<vmem>>, vector<8x32xf32>,
    %c0_50 = arith.constant 0 : index
    %c0_51 = arith.constant 0 : index
    %106 = vector.load %arg11[%c0_50, %c0_51] : memref<8x64xf32, #tpu.memory_space<vmem>>, vector<8x32xf32>
    tpu.vector_store %arg11[%c0_50, %c0_51], %104 {strides = array<i32>} : memref<8x64xf32, #tpu.memory_space<vmem>>, vector<8x32xf32>,
    %107 = vector.extract_strided_slice %88 {offsets = [0, 128], sizes = [8, 128], strides = [1, 1]} : vector<8x256xf32> to vector<8x128xf32>
    %108 = math.tanh %107 : vector<8x128xf32>
    %109 = arith.mulf %108, %16 : vector<8x128xf32>
    %110 = arith.addf %109, %19 : vector<8x128xf32>
    %111 = vector.extract_strided_slice %110 {offsets = [0, 0], sizes = [8, 32], strides = [1, 1]} : vector<8x128xf32> to vector<8x32xf32>
    %112 = vector.extract_strided_slice %110 {offsets = [0, 32], sizes = [8, 32], strides = [1, 1]} : vector<8x128xf32> to vector<8x32xf32>
    %113 = vector.extract_strided_slice %110 {offsets = [0, 64], sizes = [8, 32], strides = [1, 1]} : vector<8x128xf32> to vector<8x32xf32>
    %114 = vector.extract_strided_slice %110 {offsets = [0, 96], sizes = [8, 32], strides = [1, 1]} : vector<8x128xf32> to vector<8x32xf32>
    %c0_52 = arith.constant 0 : index
    %c32_53 = arith.constant 32 : index
    %115 = vector.load %arg12[%c0_52, %c32_53] : memref<8x64xf32, #tpu.memory_space<vmem>>, vector<8x32xf32>
    %116 = arith.mulf %112, %115 : vector<8x32xf32>
    %117 = arith.mulf %111, %113 : vector<8x32xf32>
    %118 = arith.addf %116, %117 : vector<8x32xf32>
    %119 = math.tanh %118 : vector<8x32xf32>
    %120 = arith.mulf %114, %119 : vector<8x32xf32>
    %c0_54 = arith.constant 0 : index
    %c32_55 = arith.constant 32 : index
    %121 = vector.load %arg12[%c0_54, %c32_55] : memref<8x64xf32, #tpu.memory_space<vmem>>, vector<8x32xf32>
    tpu.vector_store %arg12[%c0_54, %c32_55], %118 {strides = array<i32>} : memref<8x64xf32, #tpu.memory_space<vmem>>, vector<8x32xf32>,
    %c0_56 = arith.constant 0 : index
    %c32_57 = arith.constant 32 : index
    %122 = vector.load %arg11[%c0_56, %c32_57] : memref<8x64xf32, #tpu.memory_space<vmem>>, vector<8x32xf32>
    tpu.vector_store %arg11[%c0_56, %c32_57], %120 {strides = array<i32>} : memref<8x64xf32, #tpu.memory_space<vmem>>, vector<8x32xf32>,
    %c0_58 = arith.constant 0 : index
    %c0_59 = arith.constant 0 : index
    %123 = vector.load %arg11[%c0_58, %c0_59] : memref<8x64xf32, #tpu.memory_space<vmem>>, vector<8x64xf32>
    %124 = arith.truncf %123 : vector<8x64xf32> to vector<8x64xbf16>
    %cst_60 = arith.constant dense<0.000000e+00> : vector<8x256xf32>
    %125 = tpu.matmul %124, %20, %cst_60 {dimension_numbers = #tpu.dot_dimension_numbers<[1], [0], [0], [1], [0, 0, 1, 1], [], []>} : vector<8x64xbf16>, vector<64x256xbf16>, vector<8x256xf32> -> vector<8x256xf32>
    %126 = vector.broadcast %21 : vector<1x256xf32> to vector<8x256xf32>
    %127 = arith.addf %125, %126 : vector<8x256xf32>
    %c24 = arith.constant 24 : index
    %c0_61 = arith.constant 0 : index
    %128 = vector.load %arg13[%c24, %c0_61] : memref<64x128xf32, #tpu.memory_space<vmem>>, vector<8x128xf32>
    %129 = vector.extract_strided_slice %127 {offsets = [0, 0], sizes = [8, 128], strides = [1, 1]} : vector<8x256xf32> to vector<8x128xf32>
    %130 = arith.addf %129, %128 : vector<8x128xf32>
    %131 = math.tanh %130 : vector<8x128xf32>
    %132 = arith.mulf %131, %16 : vector<8x128xf32>
    %133 = arith.addf %132, %19 : vector<8x128xf32>
    %134 = vector.extract_strided_slice %133 {offsets = [0, 0], sizes = [8, 32], strides = [1, 1]} : vector<8x128xf32> to vector<8x32xf32>
    %135 = vector.extract_strided_slice %133 {offsets = [0, 32], sizes = [8, 32], strides = [1, 1]} : vector<8x128xf32> to vector<8x32xf32>
    %136 = vector.extract_strided_slice %133 {offsets = [0, 64], sizes = [8, 32], strides = [1, 1]} : vector<8x128xf32> to vector<8x32xf32>
    %137 = vector.extract_strided_slice %133 {offsets = [0, 96], sizes = [8, 32], strides = [1, 1]} : vector<8x128xf32> to vector<8x32xf32>
    %c0_62 = arith.constant 0 : index
    %c0_63 = arith.constant 0 : index
    %138 = vector.load %arg12[%c0_62, %c0_63] : memref<8x64xf32, #tpu.memory_space<vmem>>, vector<8x32xf32>
    %139 = arith.mulf %135, %138 : vector<8x32xf32>
    %140 = arith.mulf %134, %136 : vector<8x32xf32>
    %141 = arith.addf %139, %140 : vector<8x32xf32>
    %142 = math.tanh %141 : vector<8x32xf32>
    %143 = arith.mulf %137, %142 : vector<8x32xf32>
    %c0_64 = arith.constant 0 : index
    %c0_65 = arith.constant 0 : index
    %144 = vector.load %arg12[%c0_64, %c0_65] : memref<8x64xf32, #tpu.memory_space<vmem>>, vector<8x32xf32>
    tpu.vector_store %arg12[%c0_64, %c0_65], %141 {strides = array<i32>} : memref<8x64xf32, #tpu.memory_space<vmem>>, vector<8x32xf32>,
    %c0_66 = arith.constant 0 : index
    %c0_67 = arith.constant 0 : index
    %145 = vector.load %arg11[%c0_66, %c0_67] : memref<8x64xf32, #tpu.memory_space<vmem>>, vector<8x32xf32>
    tpu.vector_store %arg11[%c0_66, %c0_67], %143 {strides = array<i32>} : memref<8x64xf32, #tpu.memory_space<vmem>>, vector<8x32xf32>,
    %146 = vector.extract_strided_slice %127 {offsets = [0, 128], sizes = [8, 128], strides = [1, 1]} : vector<8x256xf32> to vector<8x128xf32>
    %147 = math.tanh %146 : vector<8x128xf32>
    %148 = arith.mulf %147, %16 : vector<8x128xf32>
    %149 = arith.addf %148, %19 : vector<8x128xf32>
    %150 = vector.extract_strided_slice %149 {offsets = [0, 0], sizes = [8, 32], strides = [1, 1]} : vector<8x128xf32> to vector<8x32xf32>
    %151 = vector.extract_strided_slice %149 {offsets = [0, 32], sizes = [8, 32], strides = [1, 1]} : vector<8x128xf32> to vector<8x32xf32>
    %152 = vector.extract_strided_slice %149 {offsets = [0, 64], sizes = [8, 32], strides = [1, 1]} : vector<8x128xf32> to vector<8x32xf32>
    %153 = vector.extract_strided_slice %149 {offsets = [0, 96], sizes = [8, 32], strides = [1, 1]} : vector<8x128xf32> to vector<8x32xf32>
    %c0_68 = arith.constant 0 : index
    %c32_69 = arith.constant 32 : index
    %154 = vector.load %arg12[%c0_68, %c32_69] : memref<8x64xf32, #tpu.memory_space<vmem>>, vector<8x32xf32>
    %155 = arith.mulf %151, %154 : vector<8x32xf32>
    %156 = arith.mulf %150, %152 : vector<8x32xf32>
    %157 = arith.addf %155, %156 : vector<8x32xf32>
    %158 = math.tanh %157 : vector<8x32xf32>
    %159 = arith.mulf %153, %158 : vector<8x32xf32>
    %c0_70 = arith.constant 0 : index
    %c32_71 = arith.constant 32 : index
    %160 = vector.load %arg12[%c0_70, %c32_71] : memref<8x64xf32, #tpu.memory_space<vmem>>, vector<8x32xf32>
    tpu.vector_store %arg12[%c0_70, %c32_71], %157 {strides = array<i32>} : memref<8x64xf32, #tpu.memory_space<vmem>>, vector<8x32xf32>,
    %c0_72 = arith.constant 0 : index
    %c32_73 = arith.constant 32 : index
    %161 = vector.load %arg11[%c0_72, %c32_73] : memref<8x64xf32, #tpu.memory_space<vmem>>, vector<8x32xf32>
    tpu.vector_store %arg11[%c0_72, %c32_73], %159 {strides = array<i32>} : memref<8x64xf32, #tpu.memory_space<vmem>>, vector<8x32xf32>,
    %c0_74 = arith.constant 0 : index
    %c0_75 = arith.constant 0 : index
    %162 = vector.load %arg11[%c0_74, %c0_75] : memref<8x64xf32, #tpu.memory_space<vmem>>, vector<8x64xf32>
    %163 = arith.truncf %162 : vector<8x64xf32> to vector<8x64xbf16>
    %cst_76 = arith.constant dense<0.000000e+00> : vector<8x256xf32>
    %164 = tpu.matmul %163, %20, %cst_76 {dimension_numbers = #tpu.dot_dimension_numbers<[1], [0], [0], [1], [0, 0, 1, 1], [], []>} : vector<8x64xbf16>, vector<64x256xbf16>, vector<8x256xf32> -> vector<8x256xf32>
    %165 = vector.broadcast %21 : vector<1x256xf32> to vector<8x256xf32>
    %166 = arith.addf %164, %165 : vector<8x256xf32>
    %c32_77 = arith.constant 32 : index
    %c0_78 = arith.constant 0 : index
    %167 = vector.load %arg13[%c32_77, %c0_78] : memref<64x128xf32, #tpu.memory_space<vmem>>, vector<8x128xf32>
    %168 = vector.extract_strided_slice %166 {offsets = [0, 0], sizes = [8, 128], strides = [1, 1]} : vector<8x256xf32> to vector<8x128xf32>
    %169 = arith.addf %168, %167 : vector<8x128xf32>
    %170 = math.tanh %169 : vector<8x128xf32>
    %171 = arith.mulf %170, %16 : vector<8x128xf32>
    %172 = arith.addf %171, %19 : vector<8x128xf32>
    %173 = vector.extract_strided_slice %172 {offsets = [0, 0], sizes = [8, 32], strides = [1, 1]} : vector<8x128xf32> to vector<8x32xf32>
    %174 = vector.extract_strided_slice %172 {offsets = [0, 32], sizes = [8, 32], strides = [1, 1]} : vector<8x128xf32> to vector<8x32xf32>
    %175 = vector.extract_strided_slice %172 {offsets = [0, 64], sizes = [8, 32], strides = [1, 1]} : vector<8x128xf32> to vector<8x32xf32>
    %176 = vector.extract_strided_slice %172 {offsets = [0, 96], sizes = [8, 32], strides = [1, 1]} : vector<8x128xf32> to vector<8x32xf32>
    %c0_79 = arith.constant 0 : index
    %c0_80 = arith.constant 0 : index
    %177 = vector.load %arg12[%c0_79, %c0_80] : memref<8x64xf32, #tpu.memory_space<vmem>>, vector<8x32xf32>
    %178 = arith.mulf %174, %177 : vector<8x32xf32>
    %179 = arith.mulf %173, %175 : vector<8x32xf32>
    %180 = arith.addf %178, %179 : vector<8x32xf32>
    %181 = math.tanh %180 : vector<8x32xf32>
    %182 = arith.mulf %176, %181 : vector<8x32xf32>
    %c0_81 = arith.constant 0 : index
    %c0_82 = arith.constant 0 : index
    %183 = vector.load %arg12[%c0_81, %c0_82] : memref<8x64xf32, #tpu.memory_space<vmem>>, vector<8x32xf32>
    tpu.vector_store %arg12[%c0_81, %c0_82], %180 {strides = array<i32>} : memref<8x64xf32, #tpu.memory_space<vmem>>, vector<8x32xf32>,
    %c0_83 = arith.constant 0 : index
    %c0_84 = arith.constant 0 : index
    %184 = vector.load %arg11[%c0_83, %c0_84] : memref<8x64xf32, #tpu.memory_space<vmem>>, vector<8x32xf32>
    tpu.vector_store %arg11[%c0_83, %c0_84], %182 {strides = array<i32>} : memref<8x64xf32, #tpu.memory_space<vmem>>, vector<8x32xf32>,
    %185 = vector.extract_strided_slice %166 {offsets = [0, 128], sizes = [8, 128], strides = [1, 1]} : vector<8x256xf32> to vector<8x128xf32>
    %186 = math.tanh %185 : vector<8x128xf32>
    %187 = arith.mulf %186, %16 : vector<8x128xf32>
    %188 = arith.addf %187, %19 : vector<8x128xf32>
    %189 = vector.extract_strided_slice %188 {offsets = [0, 0], sizes = [8, 32], strides = [1, 1]} : vector<8x128xf32> to vector<8x32xf32>
    %190 = vector.extract_strided_slice %188 {offsets = [0, 32], sizes = [8, 32], strides = [1, 1]} : vector<8x128xf32> to vector<8x32xf32>
    %191 = vector.extract_strided_slice %188 {offsets = [0, 64], sizes = [8, 32], strides = [1, 1]} : vector<8x128xf32> to vector<8x32xf32>
    %192 = vector.extract_strided_slice %188 {offsets = [0, 96], sizes = [8, 32], strides = [1, 1]} : vector<8x128xf32> to vector<8x32xf32>
    %c0_85 = arith.constant 0 : index
    %c32_86 = arith.constant 32 : index
    %193 = vector.load %arg12[%c0_85, %c32_86] : memref<8x64xf32, #tpu.memory_space<vmem>>, vector<8x32xf32>
    %194 = arith.mulf %190, %193 : vector<8x32xf32>
    %195 = arith.mulf %189, %191 : vector<8x32xf32>
    %196 = arith.addf %194, %195 : vector<8x32xf32>
    %197 = math.tanh %196 : vector<8x32xf32>
    %198 = arith.mulf %192, %197 : vector<8x32xf32>
    %c0_87 = arith.constant 0 : index
    %c32_88 = arith.constant 32 : index
    %199 = vector.load %arg12[%c0_87, %c32_88] : memref<8x64xf32, #tpu.memory_space<vmem>>, vector<8x32xf32>
    tpu.vector_store %arg12[%c0_87, %c32_88], %196 {strides = array<i32>} : memref<8x64xf32, #tpu.memory_space<vmem>>, vector<8x32xf32>,
    %c0_89 = arith.constant 0 : index
    %c32_90 = arith.constant 32 : index
    %200 = vector.load %arg11[%c0_89, %c32_90] : memref<8x64xf32, #tpu.memory_space<vmem>>, vector<8x32xf32>
    tpu.vector_store %arg11[%c0_89, %c32_90], %198 {strides = array<i32>} : memref<8x64xf32, #tpu.memory_space<vmem>>, vector<8x32xf32>,
    %c0_91 = arith.constant 0 : index
    %c0_92 = arith.constant 0 : index
    %201 = vector.load %arg11[%c0_91, %c0_92] : memref<8x64xf32, #tpu.memory_space<vmem>>, vector<8x64xf32>
    %202 = arith.truncf %201 : vector<8x64xf32> to vector<8x64xbf16>
    %cst_93 = arith.constant dense<0.000000e+00> : vector<8x256xf32>
    %203 = tpu.matmul %202, %20, %cst_93 {dimension_numbers = #tpu.dot_dimension_numbers<[1], [0], [0], [1], [0, 0, 1, 1], [], []>} : vector<8x64xbf16>, vector<64x256xbf16>, vector<8x256xf32> -> vector<8x256xf32>
    %204 = vector.broadcast %21 : vector<1x256xf32> to vector<8x256xf32>
    %205 = arith.addf %203, %204 : vector<8x256xf32>
    %c40 = arith.constant 40 : index
    %c0_94 = arith.constant 0 : index
    %206 = vector.load %arg13[%c40, %c0_94] : memref<64x128xf32, #tpu.memory_space<vmem>>, vector<8x128xf32>
    %207 = vector.extract_strided_slice %205 {offsets = [0, 0], sizes = [8, 128], strides = [1, 1]} : vector<8x256xf32> to vector<8x128xf32>
    %208 = arith.addf %207, %206 : vector<8x128xf32>
    %209 = math.tanh %208 : vector<8x128xf32>
    %210 = arith.mulf %209, %16 : vector<8x128xf32>
    %211 = arith.addf %210, %19 : vector<8x128xf32>
    %212 = vector.extract_strided_slice %211 {offsets = [0, 0], sizes = [8, 32], strides = [1, 1]} : vector<8x128xf32> to vector<8x32xf32>
    %213 = vector.extract_strided_slice %211 {offsets = [0, 32], sizes = [8, 32], strides = [1, 1]} : vector<8x128xf32> to vector<8x32xf32>
    %214 = vector.extract_strided_slice %211 {offsets = [0, 64], sizes = [8, 32], strides = [1, 1]} : vector<8x128xf32> to vector<8x32xf32>
    %215 = vector.extract_strided_slice %211 {offsets = [0, 96], sizes = [8, 32], strides = [1, 1]} : vector<8x128xf32> to vector<8x32xf32>
    %c0_95 = arith.constant 0 : index
    %c0_96 = arith.constant 0 : index
    %216 = vector.load %arg12[%c0_95, %c0_96] : memref<8x64xf32, #tpu.memory_space<vmem>>, vector<8x32xf32>
    %217 = arith.mulf %213, %216 : vector<8x32xf32>
    %218 = arith.mulf %212, %214 : vector<8x32xf32>
    %219 = arith.addf %217, %218 : vector<8x32xf32>
    %220 = math.tanh %219 : vector<8x32xf32>
    %221 = arith.mulf %215, %220 : vector<8x32xf32>
    %c0_97 = arith.constant 0 : index
    %c0_98 = arith.constant 0 : index
    %222 = vector.load %arg12[%c0_97, %c0_98] : memref<8x64xf32, #tpu.memory_space<vmem>>, vector<8x32xf32>
    tpu.vector_store %arg12[%c0_97, %c0_98], %219 {strides = array<i32>} : memref<8x64xf32, #tpu.memory_space<vmem>>, vector<8x32xf32>,
    %c0_99 = arith.constant 0 : index
    %c0_100 = arith.constant 0 : index
    %223 = vector.load %arg11[%c0_99, %c0_100] : memref<8x64xf32, #tpu.memory_space<vmem>>, vector<8x32xf32>
    tpu.vector_store %arg11[%c0_99, %c0_100], %221 {strides = array<i32>} : memref<8x64xf32, #tpu.memory_space<vmem>>, vector<8x32xf32>,
    %224 = vector.extract_strided_slice %205 {offsets = [0, 128], sizes = [8, 128], strides = [1, 1]} : vector<8x256xf32> to vector<8x128xf32>
    %225 = math.tanh %224 : vector<8x128xf32>
    %226 = arith.mulf %225, %16 : vector<8x128xf32>
    %227 = arith.addf %226, %19 : vector<8x128xf32>
    %228 = vector.extract_strided_slice %227 {offsets = [0, 0], sizes = [8, 32], strides = [1, 1]} : vector<8x128xf32> to vector<8x32xf32>
    %229 = vector.extract_strided_slice %227 {offsets = [0, 32], sizes = [8, 32], strides = [1, 1]} : vector<8x128xf32> to vector<8x32xf32>
    %230 = vector.extract_strided_slice %227 {offsets = [0, 64], sizes = [8, 32], strides = [1, 1]} : vector<8x128xf32> to vector<8x32xf32>
    %231 = vector.extract_strided_slice %227 {offsets = [0, 96], sizes = [8, 32], strides = [1, 1]} : vector<8x128xf32> to vector<8x32xf32>
    %c0_101 = arith.constant 0 : index
    %c32_102 = arith.constant 32 : index
    %232 = vector.load %arg12[%c0_101, %c32_102] : memref<8x64xf32, #tpu.memory_space<vmem>>, vector<8x32xf32>
    %233 = arith.mulf %229, %232 : vector<8x32xf32>
    %234 = arith.mulf %228, %230 : vector<8x32xf32>
    %235 = arith.addf %233, %234 : vector<8x32xf32>
    %236 = math.tanh %235 : vector<8x32xf32>
    %237 = arith.mulf %231, %236 : vector<8x32xf32>
    %c0_103 = arith.constant 0 : index
    %c32_104 = arith.constant 32 : index
    %238 = vector.load %arg12[%c0_103, %c32_104] : memref<8x64xf32, #tpu.memory_space<vmem>>, vector<8x32xf32>
    tpu.vector_store %arg12[%c0_103, %c32_104], %235 {strides = array<i32>} : memref<8x64xf32, #tpu.memory_space<vmem>>, vector<8x32xf32>,
    %c0_105 = arith.constant 0 : index
    %c32_106 = arith.constant 32 : index
    %239 = vector.load %arg11[%c0_105, %c32_106] : memref<8x64xf32, #tpu.memory_space<vmem>>, vector<8x32xf32>
    tpu.vector_store %arg11[%c0_105, %c32_106], %237 {strides = array<i32>} : memref<8x64xf32, #tpu.memory_space<vmem>>, vector<8x32xf32>,
    %c0_107 = arith.constant 0 : index
    %c0_108 = arith.constant 0 : index
    %240 = vector.load %arg11[%c0_107, %c0_108] : memref<8x64xf32, #tpu.memory_space<vmem>>, vector<8x64xf32>
    %241 = arith.truncf %240 : vector<8x64xf32> to vector<8x64xbf16>
    %cst_109 = arith.constant dense<0.000000e+00> : vector<8x256xf32>
    %242 = tpu.matmul %241, %20, %cst_109 {dimension_numbers = #tpu.dot_dimension_numbers<[1], [0], [0], [1], [0, 0, 1, 1], [], []>} : vector<8x64xbf16>, vector<64x256xbf16>, vector<8x256xf32> -> vector<8x256xf32>
    %243 = vector.broadcast %21 : vector<1x256xf32> to vector<8x256xf32>
    %244 = arith.addf %242, %243 : vector<8x256xf32>
    %c48 = arith.constant 48 : index
    %c0_110 = arith.constant 0 : index
    %245 = vector.load %arg13[%c48, %c0_110] : memref<64x128xf32, #tpu.memory_space<vmem>>, vector<8x128xf32>
    %246 = vector.extract_strided_slice %244 {offsets = [0, 0], sizes = [8, 128], strides = [1, 1]} : vector<8x256xf32> to vector<8x128xf32>
    %247 = arith.addf %246, %245 : vector<8x128xf32>
    %248 = math.tanh %247 : vector<8x128xf32>
    %249 = arith.mulf %248, %16 : vector<8x128xf32>
    %250 = arith.addf %249, %19 : vector<8x128xf32>
    %251 = vector.extract_strided_slice %250 {offsets = [0, 0], sizes = [8, 32], strides = [1, 1]} : vector<8x128xf32> to vector<8x32xf32>
    %252 = vector.extract_strided_slice %250 {offsets = [0, 32], sizes = [8, 32], strides = [1, 1]} : vector<8x128xf32> to vector<8x32xf32>
    %253 = vector.extract_strided_slice %250 {offsets = [0, 64], sizes = [8, 32], strides = [1, 1]} : vector<8x128xf32> to vector<8x32xf32>
    %254 = vector.extract_strided_slice %250 {offsets = [0, 96], sizes = [8, 32], strides = [1, 1]} : vector<8x128xf32> to vector<8x32xf32>
    %c0_111 = arith.constant 0 : index
    %c0_112 = arith.constant 0 : index
    %255 = vector.load %arg12[%c0_111, %c0_112] : memref<8x64xf32, #tpu.memory_space<vmem>>, vector<8x32xf32>
    %256 = arith.mulf %252, %255 : vector<8x32xf32>
    %257 = arith.mulf %251, %253 : vector<8x32xf32>
    %258 = arith.addf %256, %257 : vector<8x32xf32>
    %259 = math.tanh %258 : vector<8x32xf32>
    %260 = arith.mulf %254, %259 : vector<8x32xf32>
    %c0_113 = arith.constant 0 : index
    %c0_114 = arith.constant 0 : index
    %261 = vector.load %arg12[%c0_113, %c0_114] : memref<8x64xf32, #tpu.memory_space<vmem>>, vector<8x32xf32>
    tpu.vector_store %arg12[%c0_113, %c0_114], %258 {strides = array<i32>} : memref<8x64xf32, #tpu.memory_space<vmem>>, vector<8x32xf32>,
    %c0_115 = arith.constant 0 : index
    %c0_116 = arith.constant 0 : index
    %262 = vector.load %arg11[%c0_115, %c0_116] : memref<8x64xf32, #tpu.memory_space<vmem>>, vector<8x32xf32>
    tpu.vector_store %arg11[%c0_115, %c0_116], %260 {strides = array<i32>} : memref<8x64xf32, #tpu.memory_space<vmem>>, vector<8x32xf32>,
    %263 = vector.extract_strided_slice %244 {offsets = [0, 128], sizes = [8, 128], strides = [1, 1]} : vector<8x256xf32> to vector<8x128xf32>
    %264 = math.tanh %263 : vector<8x128xf32>
    %265 = arith.mulf %264, %16 : vector<8x128xf32>
    %266 = arith.addf %265, %19 : vector<8x128xf32>
    %267 = vector.extract_strided_slice %266 {offsets = [0, 0], sizes = [8, 32], strides = [1, 1]} : vector<8x128xf32> to vector<8x32xf32>
    %268 = vector.extract_strided_slice %266 {offsets = [0, 32], sizes = [8, 32], strides = [1, 1]} : vector<8x128xf32> to vector<8x32xf32>
    %269 = vector.extract_strided_slice %266 {offsets = [0, 64], sizes = [8, 32], strides = [1, 1]} : vector<8x128xf32> to vector<8x32xf32>
    %270 = vector.extract_strided_slice %266 {offsets = [0, 96], sizes = [8, 32], strides = [1, 1]} : vector<8x128xf32> to vector<8x32xf32>
    %c0_117 = arith.constant 0 : index
    %c32_118 = arith.constant 32 : index
    %271 = vector.load %arg12[%c0_117, %c32_118] : memref<8x64xf32, #tpu.memory_space<vmem>>, vector<8x32xf32>
    %272 = arith.mulf %268, %271 : vector<8x32xf32>
    %273 = arith.mulf %267, %269 : vector<8x32xf32>
    %274 = arith.addf %272, %273 : vector<8x32xf32>
    %275 = math.tanh %274 : vector<8x32xf32>
    %276 = arith.mulf %270, %275 : vector<8x32xf32>
    %c0_119 = arith.constant 0 : index
    %c32_120 = arith.constant 32 : index
    %277 = vector.load %arg12[%c0_119, %c32_120] : memref<8x64xf32, #tpu.memory_space<vmem>>, vector<8x32xf32>
    tpu.vector_store %arg12[%c0_119, %c32_120], %274 {strides = array<i32>} : memref<8x64xf32, #tpu.memory_space<vmem>>, vector<8x32xf32>,
    %c0_121 = arith.constant 0 : index
    %c32_122 = arith.constant 32 : index
    %278 = vector.load %arg11[%c0_121, %c32_122] : memref<8x64xf32, #tpu.memory_space<vmem>>, vector<8x32xf32>
    tpu.vector_store %arg11[%c0_121, %c32_122], %276 {strides = array<i32>} : memref<8x64xf32, #tpu.memory_space<vmem>>, vector<8x32xf32>,
    %c0_123 = arith.constant 0 : index
    %c0_124 = arith.constant 0 : index
    %279 = vector.load %arg11[%c0_123, %c0_124] : memref<8x64xf32, #tpu.memory_space<vmem>>, vector<8x64xf32>
    %280 = arith.truncf %279 : vector<8x64xf32> to vector<8x64xbf16>
    %cst_125 = arith.constant dense<0.000000e+00> : vector<8x256xf32>
    %281 = tpu.matmul %280, %20, %cst_125 {dimension_numbers = #tpu.dot_dimension_numbers<[1], [0], [0], [1], [0, 0, 1, 1], [], []>} : vector<8x64xbf16>, vector<64x256xbf16>, vector<8x256xf32> -> vector<8x256xf32>
    %282 = vector.broadcast %21 : vector<1x256xf32> to vector<8x256xf32>
    %283 = arith.addf %281, %282 : vector<8x256xf32>
    %c56 = arith.constant 56 : index
    %c0_126 = arith.constant 0 : index
    %284 = vector.load %arg13[%c56, %c0_126] : memref<64x128xf32, #tpu.memory_space<vmem>>, vector<8x128xf32>
    %285 = vector.extract_strided_slice %283 {offsets = [0, 0], sizes = [8, 128], strides = [1, 1]} : vector<8x256xf32> to vector<8x128xf32>
    %286 = arith.addf %285, %284 : vector<8x128xf32>
    %287 = math.tanh %286 : vector<8x128xf32>
    %288 = arith.mulf %287, %16 : vector<8x128xf32>
    %289 = arith.addf %288, %19 : vector<8x128xf32>
    %290 = vector.extract_strided_slice %289 {offsets = [0, 0], sizes = [8, 32], strides = [1, 1]} : vector<8x128xf32> to vector<8x32xf32>
    %291 = vector.extract_strided_slice %289 {offsets = [0, 32], sizes = [8, 32], strides = [1, 1]} : vector<8x128xf32> to vector<8x32xf32>
    %292 = vector.extract_strided_slice %289 {offsets = [0, 64], sizes = [8, 32], strides = [1, 1]} : vector<8x128xf32> to vector<8x32xf32>
    %293 = vector.extract_strided_slice %289 {offsets = [0, 96], sizes = [8, 32], strides = [1, 1]} : vector<8x128xf32> to vector<8x32xf32>
    %c0_127 = arith.constant 0 : index
    %c0_128 = arith.constant 0 : index
    %294 = vector.load %arg12[%c0_127, %c0_128] : memref<8x64xf32, #tpu.memory_space<vmem>>, vector<8x32xf32>
    %295 = arith.mulf %291, %294 : vector<8x32xf32>
    %296 = arith.mulf %290, %292 : vector<8x32xf32>
    %297 = arith.addf %295, %296 : vector<8x32xf32>
    %298 = math.tanh %297 : vector<8x32xf32>
    %299 = arith.mulf %293, %298 : vector<8x32xf32>
    %c0_129 = arith.constant 0 : index
    %c0_130 = arith.constant 0 : index
    %300 = vector.load %arg12[%c0_129, %c0_130] : memref<8x64xf32, #tpu.memory_space<vmem>>, vector<8x32xf32>
    tpu.vector_store %arg12[%c0_129, %c0_130], %297 {strides = array<i32>} : memref<8x64xf32, #tpu.memory_space<vmem>>, vector<8x32xf32>,
    %c0_131 = arith.constant 0 : index
    %c0_132 = arith.constant 0 : index
    %301 = vector.load %arg11[%c0_131, %c0_132] : memref<8x64xf32, #tpu.memory_space<vmem>>, vector<8x32xf32>
    tpu.vector_store %arg11[%c0_131, %c0_132], %299 {strides = array<i32>} : memref<8x64xf32, #tpu.memory_space<vmem>>, vector<8x32xf32>,
    %302 = vector.extract_strided_slice %283 {offsets = [0, 128], sizes = [8, 128], strides = [1, 1]} : vector<8x256xf32> to vector<8x128xf32>
    %303 = math.tanh %302 : vector<8x128xf32>
    %304 = arith.mulf %303, %16 : vector<8x128xf32>
    %305 = arith.addf %304, %19 : vector<8x128xf32>
    %306 = vector.extract_strided_slice %305 {offsets = [0, 0], sizes = [8, 32], strides = [1, 1]} : vector<8x128xf32> to vector<8x32xf32>
    %307 = vector.extract_strided_slice %305 {offsets = [0, 32], sizes = [8, 32], strides = [1, 1]} : vector<8x128xf32> to vector<8x32xf32>
    %308 = vector.extract_strided_slice %305 {offsets = [0, 64], sizes = [8, 32], strides = [1, 1]} : vector<8x128xf32> to vector<8x32xf32>
    %309 = vector.extract_strided_slice %305 {offsets = [0, 96], sizes = [8, 32], strides = [1, 1]} : vector<8x128xf32> to vector<8x32xf32>
    %c0_133 = arith.constant 0 : index
    %c32_134 = arith.constant 32 : index
    %310 = vector.load %arg12[%c0_133, %c32_134] : memref<8x64xf32, #tpu.memory_space<vmem>>, vector<8x32xf32>
    %311 = arith.mulf %307, %310 : vector<8x32xf32>
    %312 = arith.mulf %306, %308 : vector<8x32xf32>
    %313 = arith.addf %311, %312 : vector<8x32xf32>
    %314 = math.tanh %313 : vector<8x32xf32>
    %315 = arith.mulf %309, %314 : vector<8x32xf32>
    %c0_135 = arith.constant 0 : index
    %c32_136 = arith.constant 32 : index
    %316 = vector.load %arg12[%c0_135, %c32_136] : memref<8x64xf32, #tpu.memory_space<vmem>>, vector<8x32xf32>
    tpu.vector_store %arg12[%c0_135, %c32_136], %313 {strides = array<i32>} : memref<8x64xf32, #tpu.memory_space<vmem>>, vector<8x32xf32>,
    %c0_137 = arith.constant 0 : index
    %c32_138 = arith.constant 32 : index
    %317 = vector.load %arg11[%c0_137, %c32_138] : memref<8x64xf32, #tpu.memory_space<vmem>>, vector<8x32xf32>
    tpu.vector_store %arg11[%c0_137, %c32_138], %315 {strides = array<i32>} : memref<8x64xf32, #tpu.memory_space<vmem>>, vector<8x32xf32>,
    %c0_139 = arith.constant 0 : index
    %c0_140 = arith.constant 0 : index
    %318 = vector.load %arg11[%c0_139, %c0_140] : memref<8x64xf32, #tpu.memory_space<vmem>>, vector<8x64xf32>
    %319 = arith.truncf %318 : vector<8x64xf32> to vector<8x64xbf16>
    %cst_141 = arith.constant dense<0.000000e+00> : vector<8x256xf32>
    %320 = tpu.matmul %319, %20, %cst_141 {dimension_numbers = #tpu.dot_dimension_numbers<[1], [0], [0], [1], [0, 0, 1, 1], [], []>} : vector<8x64xbf16>, vector<64x256xbf16>, vector<8x256xf32> -> vector<8x256xf32>
    %321 = vector.broadcast %21 : vector<1x256xf32> to vector<8x256xf32>
    %322 = arith.addf %320, %321 : vector<8x256xf32>
    %323 = vector.extract_strided_slice %322 {offsets = [0, 128], sizes = [8, 128], strides = [1, 1]} : vector<8x256xf32> to vector<8x128xf32>
    %324 = math.tanh %323 : vector<8x128xf32>
    %325 = arith.mulf %324, %16 : vector<8x128xf32>
    %326 = arith.addf %325, %19 : vector<8x128xf32>
    %327 = vector.extract_strided_slice %326 {offsets = [0, 0], sizes = [8, 32], strides = [1, 1]} : vector<8x128xf32> to vector<8x32xf32>
    %328 = vector.extract_strided_slice %326 {offsets = [0, 32], sizes = [8, 32], strides = [1, 1]} : vector<8x128xf32> to vector<8x32xf32>
    %329 = vector.extract_strided_slice %326 {offsets = [0, 64], sizes = [8, 32], strides = [1, 1]} : vector<8x128xf32> to vector<8x32xf32>
    %330 = vector.extract_strided_slice %326 {offsets = [0, 96], sizes = [8, 32], strides = [1, 1]} : vector<8x128xf32> to vector<8x32xf32>
    %c0_142 = arith.constant 0 : index
    %c32_143 = arith.constant 32 : index
    %331 = vector.load %arg12[%c0_142, %c32_143] : memref<8x64xf32, #tpu.memory_space<vmem>>, vector<8x32xf32>
    %332 = arith.mulf %328, %331 : vector<8x32xf32>
    %333 = arith.mulf %327, %329 : vector<8x32xf32>
    %334 = arith.addf %332, %333 : vector<8x32xf32>
    %335 = math.tanh %334 : vector<8x32xf32>
    %336 = arith.mulf %330, %335 : vector<8x32xf32>
    %c0_144 = arith.constant 0 : index
    %c32_145 = arith.constant 32 : index
    %337 = vector.load %arg12[%c0_144, %c32_145] : memref<8x64xf32, #tpu.memory_space<vmem>>, vector<8x32xf32>
    tpu.vector_store %arg12[%c0_144, %c32_145], %334 {strides = array<i32>} : memref<8x64xf32, #tpu.memory_space<vmem>>, vector<8x32xf32>,
    %c0_146 = arith.constant 0 : index
    %c32_147 = arith.constant 32 : index
    %338 = vector.load %arg11[%c0_146, %c32_147] : memref<8x64xf32, #tpu.memory_space<vmem>>, vector<8x32xf32>
    tpu.vector_store %arg11[%c0_146, %c32_147], %336 {strides = array<i32>} : memref<8x64xf32, #tpu.memory_space<vmem>>, vector<8x32xf32>,
    %c0_i32_148 = arith.constant 0 : i32
    %339 = arith.cmpi eq, %arg1, %c0_i32_148 : i32
    %340 = arith.extui %339 : i1 to i32
    %c0_i32_149 = arith.constant 0 : i32
    %341 = arith.cmpi ne, %340, %c0_i32_149 : i32
    scf.if %341 {
      %c0_150 = arith.constant 0 : index
      %c32_151 = arith.constant 32 : index
      %342 = vector.load %arg11[%c0_150, %c32_151] : memref<8x64xf32, #tpu.memory_space<vmem>>, vector<8x32xf32>
      %cst_152 = arith.constant 0.000000e+00 : f32
      %343 = vector.broadcast %cst_152 : f32 to vector<8x32xf32>
      %344 = arith.maximumf %342, %343 : vector<8x32xf32>
      %c0_153 = arith.constant 0 : index
      %c0_154 = arith.constant 0 : index
      %345 = vector.load %arg6[%c0_153, %c0_154] : memref<32x128xf32, #tpu.memory_space<vmem>>, vector<32x128xf32>
      %cst_155 = arith.constant dense<0.000000e+00> : vector<8x128xf32>
      %346 = tpu.matmul %344, %345, %cst_155 {dimension_numbers = #tpu.dot_dimension_numbers<[1], [0], [0], [1], [0, 0, 1, 1], [], []>} : vector<8x32xf32>, vector<32x128xf32>, vector<8x128xf32> -> vector<8x128xf32>
      %c0_156 = arith.constant 0 : index
      %c0_157 = arith.constant 0 : index
      %347 = vector.load %arg7[%c0_156, %c0_157] : memref<1x128xf32, #tpu.memory_space<vmem>>, vector<1x128xf32>
      %348 = vector.broadcast %347 : vector<1x128xf32> to vector<8x128xf32>
      %349 = arith.addf %346, %348 : vector<8x128xf32>
      %cst_158 = arith.constant 0.000000e+00 : f32
      %350 = vector.broadcast %cst_158 : f32 to vector<8x128xf32>
      %351 = arith.maximumf %349, %350 : vector<8x128xf32>
      %c0_159 = arith.constant 0 : index
      %c0_160 = arith.constant 0 : index
      %352 = vector.load %arg8[%c0_159, %c0_160] : memref<128x10xf32, #tpu.memory_space<vmem>>, vector<128x10xf32>
      %cst_161 = arith.constant dense<0.000000e+00> : vector<8x10xf32>
      %353 = tpu.matmul %351, %352, %cst_161 {dimension_numbers = #tpu.dot_dimension_numbers<[1], [0], [0], [1], [0, 0, 1, 1], [], []>} : vector<8x128xf32>, vector<128x10xf32>, vector<8x10xf32> -> vector<8x10xf32>
      %c0_162 = arith.constant 0 : index
      %c0_163 = arith.constant 0 : index
      %354 = vector.load %arg9[%c0_162, %c0_163] : memref<1x10xf32, #tpu.memory_space<vmem>>, vector<1x10xf32>
      %355 = vector.broadcast %354 : vector<1x10xf32> to vector<8x10xf32>
      %356 = arith.addf %353, %355 : vector<8x10xf32>
      %c0_164 = arith.constant 0 : index
      %c0_165 = arith.constant 0 : index
      %357 = vector.load %arg10[%c0_164, %c0_165] : memref<8x10xf32, #tpu.memory_space<vmem>>, vector<8x10xf32>
      tpu.vector_store %arg10[%c0_164, %c0_165], %356 {strides = array<i32>} : memref<8x10xf32, #tpu.memory_space<vmem>>, vector<8x10xf32>,
    } else {
    }
    return
  }
  func.func @transform_0(%arg0: i32, %arg1: i32) -> (i32, i32, i32, i32) {
    %c0_i32 = arith.constant 0 : i32
    %c0_i32_0 = arith.constant 0 : i32
    %c0_i32_1 = arith.constant 0 : i32
    return %arg0, %arg1, %c0_i32, %c0_i32_0 : i32, i32, i32, i32
  }
  func.func @transform_1(%arg0: i32, %arg1: i32) -> (i32, i32) {
    %c0_i32 = arith.constant 0 : i32
    %c0_i32_0 = arith.constant 0 : i32
    %c0_i32_1 = arith.constant 0 : i32
    return %c0_i32, %c0_i32_0 : i32, i32
  }
  func.func @transform_2(%arg0: i32, %arg1: i32) -> (i32, i32) {
    %c0_i32 = arith.constant 0 : i32
    %c0_i32_0 = arith.constant 0 : i32
    %c0_i32_1 = arith.constant 0 : i32
    return %c0_i32, %c0_i32_0 : i32, i32
  }
  func.func @transform_3(%arg0: i32, %arg1: i32) -> (i32, i32) {
    %c0_i32 = arith.constant 0 : i32
    %c0_i32_0 = arith.constant 0 : i32
    %c0_i32_1 = arith.constant 0 : i32
    return %c0_i32, %c0_i32_0 : i32, i32
  }
  func.func @transform_4(%arg0: i32, %arg1: i32) -> (i32, i32) {
    %c0_i32 = arith.constant 0 : i32
    %c0_i32_0 = arith.constant 0 : i32
    %c0_i32_1 = arith.constant 0 : i32
    return %c0_i32, %c0_i32_0 : i32, i32
  }
  func.func @transform_5(%arg0: i32, %arg1: i32) -> (i32, i32) {
    %c0_i32 = arith.constant 0 : i32
    %c0_i32_0 = arith.constant 0 : i32
    %c0_i32_1 = arith.constant 0 : i32
    return %c0_i32, %c0_i32_0 : i32, i32
  }
  func.func @transform_6(%arg0: i32, %arg1: i32) -> (i32, i32) {
    %c0_i32 = arith.constant 0 : i32
    %c0_i32_0 = arith.constant 0 : i32
    %c0_i32_1 = arith.constant 0 : i32
    return %c0_i32, %c0_i32_0 : i32, i32
  }
  func.func @transform_7(%arg0: i32, %arg1: i32) -> (i32, i32) {
    %c0_i32 = arith.constant 0 : i32
    %c0_i32_0 = arith.constant 0 : i32
    %c0_i32_1 = arith.constant 0 : i32
    return %c0_i32, %c0_i32_0 : i32, i32
  }
  func.func @transform_8(%arg0: i32, %arg1: i32) -> (i32, i32) {
    %c0_i32 = arith.constant 0 : i32
    %c0_i32_0 = arith.constant 0 : i32
    return %arg0, %c0_i32 : i32, i32
  }
}

</mosaic_0001>

<bundles_post_ra>
// kernel: lstm_forward.1
= control target key start
LH: loop header
LB: loop body
LE: loop exit
PB: predicated region body
PF: predicated region fallthrough
CT: control target
= control target key end

     0   :  { %vm34_vm0 = vcmask 523264   ;;  %v1575_v1 = vmov 0   ;;  %v1576_v2 = vmov 0.0   ;;  %vm73_vm1 = vcmask 130048   ;;  %s1579_s27 = smov 32   ;;  %s1580_s28 = smov 96   ;;  %s2052_s2 = inlined_call_operand.vmem [shape: bf16[64,256], index: 2, kind: input, shape index: {}]   ;;  %s2053_s1 = inlined_call_operand.vmem [shape: bf16[16,128], index: 1, kind: input, shape index: {}]   ;;  %s2054_s0 = inlined_call_operand.vmem [shape: bf16[1,1,64,16], index: 0, kind: input, shape index: {}]   ;;  %s2055_s3 = inlined_call_operand.vmem [shape: f32[1,256], index: 3, kind: input, shape index: {}]   ;;  %s2056_s4 = inlined_call_operand.vmem [shape: f32[32,128], index: 4, kind: input, shape index: {}]   ;;  %s2057_s6 = inlined_call_operand.vmem [shape: f32[128,10], index: 6, kind: input, shape index: {}]   ;;  %s2058_s5 = inlined_call_operand.vmem [shape: f32[1,128], index: 5, kind: input, shape index: {}]   ;;  %s2059_s7 = inlined_call_operand.vmem [shape: f32[1,10], index: 7, kind: input, shape index: {}]   ;;  %s2060_s8 = inlined_call_operand.vmem [shape: f32[8,10], index: 8, kind: output, shape index: {}]  }
   0x1   :  { %v1631_v0 = vld [vmem:[%s2052_s2 + $0x4] ss:$8 sps:$4 sm:$0xff]   ;;  %264 = vmatprep.mubr.bf16.mxu1 %v1575_v1  ;;  %35 = vst.msk [vmem:[#allocation2] sm:$0xff] %vm34_vm0, %v1576_v2  ;;  %36 = vst.msk [vmem:[#allocation3] sm:$0xff] %vm34_vm0, %v1576_v2  ;;  %v1641_v3 = vld [vmem:[%s2052_s2] ss:$8 sps:$4 sm:$0xff]   ;;  %v159_v15 = vlaneseq }
   0x2   :  { %232 = vmatprep.subr.bf16.mxu1 %v1631_v0  ;;  %v1647_v4 = vld [vmem:[%s2052_s2 + $0x14] ss:$8 sps:$4 sm:$0xff]   ;;  %v1653_v5 = vld [vmem:[%s2052_s2 + $0x10] ss:$8 sps:$4 sm:$0xff]   ;;  %v1658_v6 = vld [vmem:[%s2052_s2 + $0x24] ss:$8 sps:$4 sm:$0xff]  }
   0x3   :  { %233 = vmatpush1.bf16.msra.mxu1 %v1641_v3  ;;  %v1503_v7 = vld [vmem:[%s2053_s1] sm:$0xff]   ;;  %v1677_v10 = vld [vmem:[%s2052_s2 + $0x34] ss:$8 sps:$4 sm:$0xff]   ;;  %v1508_v11 = vld [vmem:[%s2054_s0 + $0x8] sm:$0xff]   ;;  %v1712_v16 = vshrl.u32 %v159_v15, 7  ;;  %v160_v28 = vand.u32 127, %v159_v15 }
   0x4   :  { %234 = vmatprep.subr.bf16.mxu1 %v1647_v4  ;;  %1400 = vmatprep.subr.bf16.mxu0 %v1503_v7  ;;  %v1506_v8 = vld [vmem:[%s2054_s0] sm:$0xff]   ;;  %v1689_v12 = vld [vmem:[%s2052_s2 + $0x30] ss:$8 sps:$4 sm:$0xff]   ;;  %v1577_v31 = vmov 0.5   ;;  %vm303_vm5 = vcmask 261120   ;;  %vm414_vm6 = vcmask 523520  }
   0x5   :  { %v1671_v9 = vld [vmem:[%s2052_s2 + $0x20] ss:$8 sps:$4 sm:$0xff]   ;;  %1401 = vmatpush3.bf16.msra.mxu0 %v1503_v7  ;;  %1402 = vmatprep.mubr.msk.bf16.mxu0 %vm73_vm1, %v1506_v8  ;;  %v180_v19 = vsub.s32 0, %v1712_v16  ;;  %vm161_vm2 = vcmp.ge.s32.totalorder %v160_v28, 64  ;;  %vm162_vm3 = vcmp.lt.s32.totalorder %v160_v28, 96  ;;  %v184_v52 = vsub.s32 1, %v1712_v16 }
   0x6   :  { %536 = vmatprep.subr.bf16.mxu0 %v1631_v0  ;;  %v174_v21 = vld [vmem:[%s2055_s3] sm:$0x3]  ;;  %vm163_vm4 = vmand %vm161_vm2, %vm162_vm3  ;;  %s1578_s3 = smov 64   ;;  %vm1582_vm7 = vmmov 0   ;;  %vm1338_vm8 = vcmask 80896  }
   0x7   :  { %235 = vmatpush1.bf16.msra.mxu1 %v1653_v5  ;;  %v1724_v23 = vrot.slane %v174_v21, %v180_v19  ;;  %v1727_v32 = vsel %vm163_vm4, 1.0, %v1577_v31  ;;  %v1729_v34 = vsel %vm163_vm4, 0.0, %v1577_v31  ;;  %v1753_v53 = vrot.slane %v174_v21, %v184_v52 }
   0x8   :  { %236 = vmatprep.subr.bf16.mxu1 %v1658_v6  ;;  %1403 = vmatmul.mubr.msk.bf16.vlgmr.msra.gmra.mrb[0].mxu0 %vm73_vm1, %v1508_v11  ;;  %v175_v13 = vld [vmem:[#allocation2] sm:$0xff]  ;;  %v277_v37 = vld [vmem:[#allocation3] sm:$0xff] }
   0x9   :  { %537 = vmatpush1.bf16.msra.mxu0 %v1641_v3  ;;  %v176_v14 = vpack.c.bf16 %v175_v13, %v175_v13 }
   0xa   :  { %538 = vmatprep.subr.bf16.mxu0 %v1647_v4 }
   0xb   :  { %237 = vmatpush1.bf16.msra.mxu1 %v1671_v9 }
   0xc   :  { %238 = vmatprep.subr.bf16.mxu1 %v1677_v10 }
   0xd   :  { %539 = vmatpush1.bf16.msra.mxu0 %v1653_v5 }
   0xe   :  { %540 = vmatprep.subr.bf16.mxu0 %v1658_v6 }
   0xf   :  { %239 = vmatpush1.bf16.msra.mxu1 %v1689_v12 }
  0x10   :  { %315 = vmatprep.subr.bf16.mxu1 %v1631_v0 }
  0x11   :  { %541 = vmatpush1.bf16.msra.mxu0 %v1671_v9 }
  0x12   :  { %1361 = vmatmul.mubr.msk.bf16.vlgmr.msra.gmra.mrb[0].mxu1 %vm34_vm0, %v176_v14  ;;  %542 = vmatprep.subr.bf16.mxu0 %v1677_v10 }
  0x13   :  { %316 = vmatpush1.bf16.msra.mxu1 %v1641_v3  ;;  %347 = vmatprep.mubr.bf16.mxu1 %v1575_v1 }
  0x14   :  { %317 = vmatprep.subr.bf16.mxu1 %v1647_v4 }
  0x15   :  { %543 = vmatpush1.bf16.msra.mxu0 %v1689_v12 }
  0x16   :  { %756 = vmatprep.subr.bf16.mxu0 %v1631_v0 }
  0x17   :  { %318 = vmatpush1.bf16.msra.mxu1 %v1653_v5 }
  0x18   :  { %319 = vmatprep.subr.bf16.mxu1 %v1658_v6 }
  0x1b   :  { %320 = vmatpush1.bf16.msra.mxu1 %v1671_v9 }
  0x1c   :  { %321 = vmatprep.subr.bf16.mxu1 %v1677_v10 }
  0x1f   :  { %322 = vmatpush1.bf16.msra.mxu1 %v1689_v12 }
  0x20   :  { %426 = vmatprep.subr.bf16.mxu1 %v1631_v0 }
  0xdb   :  { %v1714_v17 = vpop.f32.mrb[0].mxu0 }
  0xdc   :  { %v120_v18 = vpop.f32.mrb[1].mxu0 }
  0xdd   :  { %v1717_v20 = vpop.f32.mrb[2].mxu0 }
  0xde   :  { %v1722_v22 = vpop.f32.mrb[3].mxu0 }
  0xe5   :  { %v266_v24 = vpop.f32.mrb[0].mxu1 }
  0xe6   :  { %v267_v25 = vadd.f32 %v266_v24, %v1724_v23  ;;  %v268_v26 = vpop.f32.mrb[1].mxu1 }
  0xe7   :  { %v269_v27 = vpop.f32.mrb[2].mxu1 }
  0xe8   :  { %v273_v29 = vadd.f32 %v267_v25, %v120_v18  ;;  %v270_v30 = vpop.f32.mrb[3].mxu1 }
  0xea   :  { %1511 = vtanh.f32 %v273_v29 }
  0xf4   :  { %v1512_v33 = vpop.eup %1511 }
  0xf5   :  { %v275_v35 = vmul.f32 %v1512_v33, %v1727_v32 }
  0xf7   :  { %v276_v36 = vadd.f32 %v275_v35, %v1729_v34 }
  0xf9   :  { %284 = vrot.lane.b32.xlu0 %v276_v36, %s1578_s3 }
  0xfd   :  { %279 = vrot.lane.b32.xlu0 %v277_v37, %s1579_s27 }
 0x16b   :  { %v285_v38 = vpop.permute.xlu0 %284 }
 0x16c   :  { %v287_v39 = vmul.f32 %v285_v38, %v276_v36 }
 0x16e   :  { %289 = vrot.lane.b32.xlu1 %v287_v39, %s1579_s27 }
 0x16f   :  { %v280_v40 = vpop.permute.xlu0 %279 }
 0x170   :  { %v282_v41 = vmul.f32 %v280_v40, %v276_v36 }
 0x1e0   :  { %v290_v42 = vpop.permute.xlu1 %289 }
 0x1e1   :  { %v292_v43 = vadd.f32 %v290_v42, %v282_v41 }
 0x1e3   :  { %1513 = vtanh.f32 %v292_v43 }
 0x1ed   :  { %v1514_v44 = vpop.eup %1513 }
 0x1ee   :  { %295 = vrot.lane.b32.xlu1 %v1514_v44, %s1578_s3 }
 0x1f2   :  { %300 = vrot.lane.b32.xlu1 %v292_v43, %s1580_s28 }
 0x260   :  { %v296_v45 = vpop.permute.xlu1 %295 }
 0x261   :  { %v298_v46 = vmul.f32 %v296_v45, %v276_v36 }
 0x263   :  { %306 = vrot.lane.b32.xlu0 %v298_v46, %s1579_s27 }
 0x264   :  { %v301_v47 = vpop.permute.xlu1 %300 }
 0x265   :  { %304 = vst.msk [vmem:[#allocation3] sm:$0xff] %vm303_vm5, %v301_v47 }
 0x26c   :  { %v361_v48 = vld [vmem:[#allocation3] sm:$0xff] }
 0x26d   :  { %363 = vrot.lane.b32.xlu1 %v361_v48, %s1579_s27 }
 0x2d5   :  { %v307_v49 = vpop.permute.xlu0 %306 }
 0x2d6   :  { %309 = vst.msk [vmem:[#allocation2] sm:$0xff] %vm303_vm5, %v307_v49 }
 0x2dd   :  { %v310_v50 = vld [vmem:[#allocation2] sm:$0xff] }
 0x2de   :  { %v311_v51 = vpack.c.bf16 %v310_v50, %v310_v50 }
 0x2df   :  { %v364_v13 = vpop.permute.xlu1 %363 }
 0x2e0   :  { %1362 = vmatmul.mubr.msk.bf16.vlgmr.msra.gmra.mrb[4].mxu1 %vm34_vm0, %v311_v51 }
 0x2e1   :  { %427 = vmatpush1.bf16.msra.mxu1 %v1641_v3  ;;  %458 = vmatprep.mubr.bf16.mxu1 %v1575_v1 }
 0x2e2   :  { %428 = vmatprep.subr.bf16.mxu1 %v1647_v4 }
 0x2e5   :  { %429 = vmatpush1.bf16.msra.mxu1 %v1653_v5 }
 0x2e6   :  { %430 = vmatprep.subr.bf16.mxu1 %v1658_v6 }
 0x2e9   :  { %431 = vmatpush1.bf16.msra.mxu1 %v1671_v9 }
 0x2ea   :  { %432 = vmatprep.subr.bf16.mxu1 %v1677_v10 }
 0x2ed   :  { %433 = vmatpush1.bf16.msra.mxu1 %v1689_v12 }
 0x2ee   :  { %646 = vmatprep.subr.bf16.mxu1 %v1631_v0 }
 0x3b3   :  { %v349_v54 = vpop.f32.mrb[4].mxu1 }
 0x3b4   :  { %v350_v55 = vadd.f32 %v349_v54, %v1724_v23  ;;  %v351_v56 = vpop.f32.mrb[5].mxu1 }
 0x3b5   :  { %v352_v57 = vadd.f32 %v351_v56, %v1753_v53  ;;  %v353_v58 = vpop.f32.mrb[6].mxu1 }
 0x3b6   :  { %v357_v59 = vadd.f32 %v350_v55, %v1722_v22  ;;  %v354_v60 = vpop.f32.mrb[7].mxu1 }
 0x3b7   :  { %1515 = vtanh.f32 %v352_v57 }
 0x3b8   :  { %1517 = vtanh.f32 %v357_v59 }
 0x3c1   :  { %v1516_v61 = vpop.eup %1515 }
 0x3c2   :  { %v1518_v62 = vpop.eup %1517  ;;  %v394_v63 = vmul.f32 %v1516_v61, %v1727_v32 }
 0x3c3   :  { %v359_v7 = vmul.f32 %v1518_v62, %v1727_v32 }
 0x3c4   :  { %v395_v8 = vadd.f32 %v394_v63, %v1729_v34 }
 0x3c5   :  { %v360_v11 = vadd.f32 %v359_v7, %v1729_v34 }
 0x3c6   :  { %399 = vrot.lane.b32.xlu1 %v395_v8, %s1578_s3 }
 0x3c7   :  { %368 = vrot.lane.b32.xlu0 %v360_v11, %s1578_s3  ;;  %v366_v19 = vmul.f32 %v364_v13, %v360_v11 }
 0x438   :  { %v400_v14 = vpop.permute.xlu1 %399 }
 0x439   :  { %v402_v15 = vmul.f32 %v400_v14, %v395_v8  ;;  %v369_v16 = vpop.permute.xlu0 %368 }
 0x43a   :  { %v371_v18 = vmul.f32 %v369_v16, %v360_v11 }
 0x43b   :  { %404 = vrot.lane.b32.xlu1 %v402_v15, %s1579_s27 }
 0x43c   :  { %373 = vrot.lane.b32.xlu0 %v371_v18, %s1579_s27  ;;  %v1509_v18 = vld [vmem:[%s2054_s0 + $0x10] sm:$0xff]  }
 0x43d   :  { %1406 = vmatprep.mubr.msk.bf16.mxu0 %vm73_vm1, %v1509_v18 }
 0x4ad   :  { %v405_v28 = vpop.permute.xlu1 %404 }
 0x4ae   :  { %v374_v21 = vpop.permute.xlu0 %373 }
 0x4af   :  { %v376_v22 = vadd.f32 %v374_v21, %v366_v19  ;;  %v1510_v19 = vld [vmem:[%s2054_s0 + $0x18] sm:$0xff]  }
 0x4b0   :  { %1407 = vmatmul.mubr.msk.bf16.gmra.mrb[4].mxu0 %vm73_vm1, %v1510_v19 }
 0x4b1   :  { %1519 = vtanh.f32 %v376_v22  ;;  %384 = vrot.lane.b32.xlu0 %v376_v22, %s1580_s28  ;;  %568 = vmatprep.mubr.bf16.mxu0 %v1575_v1 }
 0x4bb   :  { %v1520_v24 = vpop.eup %1519 }
 0x4bc   :  { %379 = vrot.lane.b32.xlu0 %v1520_v24, %s1578_s3 }
 0x523   :  { %v385_v25 = vpop.permute.xlu0 %384 }
 0x524   :  { %387 = vst.msk [vmem:[#allocation3] sm:$0xff] %vm303_vm5, %v385_v25 }
 0x52b   :  { %v396_v26 = vld [vmem:[#allocation3] sm:$0xff] }
 0x52c   :  { %v397_v27 = vmul.f32 %v396_v26, %v395_v8 }
 0x52e   :  { %v407_v29 = vadd.f32 %v405_v28, %v397_v27  ;;  %v380_v30 = vpop.permute.xlu0 %379 }
 0x52f   :  { %v382_v31 = vmul.f32 %v380_v30, %v360_v11 }
 0x530   :  { %1521 = vtanh.f32 %v407_v29  ;;  %415 = vst.msk [vmem:[#allocation3] sm:$0xff] %vm414_vm6, %v407_v29 }
 0x531   :  { %389 = vrot.lane.b32.xlu0 %v382_v31, %s1579_s27 }
 0x537   :  { %v472_v38 = vld [vmem:[#allocation3] sm:$0xff] }
 0x53a   :  { %v1522_v33 = vpop.eup %1521 }
 0x53b   :  { %410 = vrot.lane.b32.xlu1 %v1522_v33, %s1578_s3 }
 0x583   :  { %v1815_v27 = vpop.f32.mrb[4].mxu0 }
 0x584   :  { %v1817_v28 = vpop.f32.mrb[5].mxu0 }
 0x585   :  { %v1819_v29 = vpop.f32.mrb[6].mxu0 }
 0x586   :  { %v1821_v30 = vpop.f32.mrb[7].mxu0 }
 0x5a3   :  { %v390_v35 = vpop.permute.xlu0 %389 }
 0x5a4   :  { %392 = vst.msk [vmem:[#allocation2] sm:$0xff] %vm303_vm5, %v390_v35 }
 0x5ad   :  { %v411_v36 = vpop.permute.xlu1 %410 }
 0x5ae   :  { %v413_v37 = vmul.f32 %v411_v36, %v395_v8 }
 0x5b0   :  { %417 = vrot.lane.b32.xlu1 %v413_v37, %s1578_s3 }
 0x5b4   :  { %474 = vrot.lane.b32.xlu1 %v472_v38, %s1579_s27 }
 0x622   :  { %v418_v39 = vpop.permute.xlu1 %417 }
 0x623   :  { %420 = vst.msk [vmem:[#allocation2] sm:$0xff] %vm414_vm6, %v418_v39 }
 0x626   :  { %v475_v56 = vpop.permute.xlu1 %474 }
 0x62a   :  { %v421_v40 = vld [vmem:[#allocation2] sm:$0xff] }
 0x62b   :  { %v422_v41 = vpack.c.bf16 %v421_v40, %v421_v40 }
 0x62d   :  { %1363 = vmatmul.mubr.msk.bf16.vlgmr.msra.gmra.mrb[8].mxu1 %vm34_vm0, %v422_v41 }
 0x62e   :  { %647 = vmatpush1.bf16.msra.mxu1 %v1641_v3  ;;  %678 = vmatprep.mubr.bf16.mxu1 %v1575_v1 }
 0x62f   :  { %648 = vmatprep.subr.bf16.mxu1 %v1647_v4 }
 0x632   :  { %649 = vmatpush1.bf16.msra.mxu1 %v1653_v5 }
 0x633   :  { %650 = vmatprep.subr.bf16.mxu1 %v1658_v6 }
 0x636   :  { %651 = vmatpush1.bf16.msra.mxu1 %v1671_v9 }
 0x637   :  { %652 = vmatprep.subr.bf16.mxu1 %v1677_v10 }
 0x63a   :  { %653 = vmatpush1.bf16.msra.mxu1 %v1689_v12 }
 0x63b   :  { %866 = vmatprep.subr.bf16.mxu1 %v1631_v0 }
 0x700   :  { %v460_v42 = vpop.f32.mrb[8].mxu1 }
 0x701   :  { %v461_v43 = vadd.f32 %v460_v42, %v1724_v23  ;;  %v462_v44 = vpop.f32.mrb[9].mxu1 }
 0x702   :  { %v463_v45 = vadd.f32 %v462_v44, %v1753_v53  ;;  %v464_v46 = vpop.f32.mrb[10].mxu1 }
 0x703   :  { %v468_v47 = vadd.f32 %v1714_v17, %v461_v43  ;;  %v465_v48 = vpop.f32.mrb[11].mxu1 }
 0x704   :  { %1523 = vtanh.f32 %v463_v45 }
 0x705   :  { %1525 = vtanh.f32 %v468_v47 }
 0x70e   :  { %v1524_v49 = vpop.eup %1523 }
 0x70f   :  { %v1526_v50 = vpop.eup %1525  ;;  %v505_v51 = vmul.f32 %v1524_v49, %v1727_v32 }
 0x710   :  { %v470_v52 = vmul.f32 %v1526_v50, %v1727_v32 }
 0x711   :  { %v506_v54 = vadd.f32 %v505_v51, %v1729_v34 }
 0x712   :  { %v471_v55 = vadd.f32 %v470_v52, %v1729_v34 }
 0x713   :  { %510 = vrot.lane.b32.xlu1 %v506_v54, %s1578_s3 }
 0x714   :  { %479 = vrot.lane.b32.xlu0 %v471_v55, %s1578_s3  ;;  %v477_v60 = vmul.f32 %v475_v56, %v471_v55 }
 0x785   :  { %v511_v57 = vpop.permute.xlu1 %510 }
 0x786   :  { %v513_v17 = vmul.f32 %v511_v57, %v506_v54  ;;  %v480_v58 = vpop.permute.xlu0 %479 }
 0x787   :  { %v482_v59 = vmul.f32 %v480_v58, %v471_v55 }
 0x788   :  { %515 = vrot.lane.b32.xlu1 %v513_v17, %s1579_s27 }
 0x789   :  { %484 = vrot.lane.b32.xlu0 %v482_v59, %s1579_s27 }
 0x7fa   :  { %v516_v13 = vpop.permute.xlu1 %515 }
 0x7fb   :  { %v485_v61 = vpop.permute.xlu0 %484 }
 0x7fc   :  { %v487_v62 = vadd.f32 %v485_v61, %v477_v60 }
 0x7fe   :  { %1527 = vtanh.f32 %v487_v62  ;;  %495 = vrot.lane.b32.xlu0 %v487_v62, %s1580_s28 }
 0x808   :  { %v1528_v63 = vpop.eup %1527 }
 0x809   :  { %490 = vrot.lane.b32.xlu0 %v1528_v63, %s1578_s3 }
 0x870   :  { %v496_v7 = vpop.permute.xlu0 %495 }
 0x871   :  { %498 = vst.msk [vmem:[#allocation3] sm:$0xff] %vm303_vm5, %v496_v7 }
 0x878   :  { %v507_v8 = vld [vmem:[#allocation3] sm:$0xff] }
 0x879   :  { %v508_v11 = vmul.f32 %v507_v8, %v506_v54 }
 0x87b   :  { %v518_v14 = vadd.f32 %v516_v13, %v508_v11  ;;  %v491_v15 = vpop.permute.xlu0 %490 }
 0x87c   :  { %v493_v16 = vmul.f32 %v491_v15, %v471_v55 }
 0x87d   :  { %1529 = vtanh.f32 %v518_v14  ;;  %525 = vst.msk [vmem:[#allocation3] sm:$0xff] %vm414_vm6, %v518_v14 }
 0x87e   :  { %500 = vrot.lane.b32.xlu0 %v493_v16, %s1579_s27 }
 0x884   :  { %v582_v26 = vld [vmem:[#allocation3] sm:$0xff] }
 0x887   :  { %v1530_v21 = vpop.eup %1529 }
 0x888   :  { %521 = vrot.lane.b32.xlu1 %v1530_v21, %s1578_s3 }
 0x8f0   :  { %v501_v22 = vpop.permute.xlu0 %500 }
 0x8f1   :  { %503 = vst.msk [vmem:[#allocation2] sm:$0xff] %vm303_vm5, %v501_v22 }
 0x8fa   :  { %v522_v24 = vpop.permute.xlu1 %521 }
 0x8fb   :  { %v524_v25 = vmul.f32 %v522_v24, %v506_v54 }
 0x8fd   :  { %527 = vrot.lane.b32.xlu1 %v524_v25, %s1578_s3 }
 0x901   :  { %584 = vrot.lane.b32.xlu1 %v582_v26, %s1579_s27 }
 0x96f   :  { %v528_v31 = vpop.permute.xlu1 %527 }
 0x970   :  { %530 = vst.msk [vmem:[#allocation2] sm:$0xff] %vm414_vm6, %v528_v31 }
 0x973   :  { %v585_v49 = vpop.permute.xlu1 %584 }
 0x977   :  { %v531_v33 = vld [vmem:[#allocation2] sm:$0xff] }
 0x978   :  { %v532_v35 = vpack.c.bf16 %v531_v33, %v531_v33 }
 0x97a   :  { %1364 = vmatmul.mubr.msk.bf16.vlgmr.msra.gmra.mrb[8].mxu0 %vm34_vm0, %v532_v35 }
 0x97b   :  { %757 = vmatpush1.bf16.msra.mxu0 %v1641_v3  ;;  %788 = vmatprep.mubr.bf16.mxu0 %v1575_v1 }
 0x97c   :  { %758 = vmatprep.subr.bf16.mxu0 %v1647_v4 }
 0x97f   :  { %759 = vmatpush1.bf16.msra.mxu0 %v1653_v5 }
 0x980   :  { %760 = vmatprep.subr.bf16.mxu0 %v1658_v6 }
 0x983   :  { %761 = vmatpush1.bf16.msra.mxu0 %v1671_v9 }
 0x984   :  { %762 = vmatprep.subr.bf16.mxu0 %v1677_v10 }
 0x987   :  { %763 = vmatpush1.bf16.msra.mxu0 %v1689_v12 }
 0x988   :  { %976 = vmatprep.subr.bf16.mxu0 %v1631_v0 }
 0xa4d   :  { %v570_v36 = vpop.f32.mrb[8].mxu0 }
 0xa4e   :  { %v571_v37 = vadd.f32 %v570_v36, %v1724_v23  ;;  %v572_v38 = vpop.f32.mrb[9].mxu0 }
 0xa4f   :  { %v573_v39 = vadd.f32 %v572_v38, %v1753_v53  ;;  %v574_v40 = vpop.f32.mrb[10].mxu0 }
 0xa50   :  { %v578_v41 = vadd.f32 %v1717_v20, %v571_v37  ;;  %v575_v42 = vpop.f32.mrb[11].mxu0 }
 0xa51   :  { %1531 = vtanh.f32 %v573_v39 }
 0xa52   :  { %1533 = vtanh.f32 %v578_v41 }
 0xa5b   :  { %v1532_v43 = vpop.eup %1531 }
 0xa5c   :  { %v1534_v44 = vpop.eup %1533  ;;  %v615_v45 = vmul.f32 %v1532_v43, %v1727_v32 }
 0xa5d   :  { %v580_v46 = vmul.f32 %v1534_v44, %v1727_v32 }
 0xa5e   :  { %v616_v47 = vadd.f32 %v615_v45, %v1729_v34 }
 0xa5f   :  { %v581_v48 = vadd.f32 %v580_v46, %v1729_v34 }
 0xa60   :  { %620 = vrot.lane.b32.xlu1 %v616_v47, %s1578_s3 }
 0xa61   :  { %589 = vrot.lane.b32.xlu0 %v581_v48, %s1578_s3  ;;  %v587_v54 = vmul.f32 %v585_v49, %v581_v48 }
 0xad2   :  { %v621_v50 = vpop.permute.xlu1 %620 }
 0xad3   :  { %v623_v20 = vmul.f32 %v621_v50, %v616_v47  ;;  %v590_v51 = vpop.permute.xlu0 %589 }
 0xad4   :  { %v592_v52 = vmul.f32 %v590_v51, %v581_v48 }
 0xad5   :  { %625 = vrot.lane.b32.xlu1 %v623_v20, %s1579_s27 }
 0xad6   :  { %594 = vrot.lane.b32.xlu0 %v592_v52, %s1579_s27 }
 0xb47   :  { %v626_v60 = vpop.permute.xlu1 %625 }
 0xb48   :  { %v595_v55 = vpop.permute.xlu0 %594 }
 0xb49   :  { %v597_v56 = vadd.f32 %v595_v55, %v587_v54 }
 0xb4b   :  { %1535 = vtanh.f32 %v597_v56  ;;  %605 = vrot.lane.b32.xlu0 %v597_v56, %s1580_s28 }
 0xb55   :  { %v1536_v57 = vpop.eup %1535 }
 0xb56   :  { %600 = vrot.lane.b32.xlu0 %v1536_v57, %s1578_s3 }
 0xbbd   :  { %v606_v17 = vpop.permute.xlu0 %605 }
 0xbbe   :  { %608 = vst.msk [vmem:[#allocation3] sm:$0xff] %vm303_vm5, %v606_v17 }
 0xbc5   :  { %v617_v58 = vld [vmem:[#allocation3] sm:$0xff] }
 0xbc6   :  { %v618_v59 = vmul.f32 %v617_v58, %v616_v47 }
 0xbc8   :  { %v628_v61 = vadd.f32 %v626_v60, %v618_v59  ;;  %v601_v62 = vpop.permute.xlu0 %600 }
 0xbc9   :  { %v603_v63 = vmul.f32 %v601_v62, %v581_v48 }
 0xbca   :  { %1537 = vtanh.f32 %v628_v61  ;;  %635 = vst.msk [vmem:[#allocation3] sm:$0xff] %vm414_vm6, %v628_v61 }
 0xbcb   :  { %610 = vrot.lane.b32.xlu0 %v603_v63, %s1579_s27 }
 0xbd1   :  { %v692_v14 = vld [vmem:[#allocation3] sm:$0xff] }
 0xbd4   :  { %v1538_v7 = vpop.eup %1537 }
 0xbd5   :  { %631 = vrot.lane.b32.xlu1 %v1538_v7, %s1578_s3 }
 0xc3d   :  { %v611_v8 = vpop.permute.xlu0 %610 }
 0xc3e   :  { %613 = vst.msk [vmem:[#allocation2] sm:$0xff] %vm303_vm5, %v611_v8 }
 0xc47   :  { %v632_v11 = vpop.permute.xlu1 %631 }
 0xc48   :  { %v634_v13 = vmul.f32 %v632_v11, %v616_v47 }
 0xc4a   :  { %637 = vrot.lane.b32.xlu1 %v634_v13, %s1578_s3 }
 0xc4e   :  { %694 = vrot.lane.b32.xlu1 %v692_v14, %s1579_s27 }
 0xcbc   :  { %v638_v15 = vpop.permute.xlu1 %637 }
 0xcbd   :  { %640 = vst.msk [vmem:[#allocation2] sm:$0xff] %vm414_vm6, %v638_v15 }
 0xcc0   :  { %v695_v39 = vpop.permute.xlu1 %694 }
 0xcc4   :  { %v641_v16 = vld [vmem:[#allocation2] sm:$0xff] }
 0xcc5   :  { %v642_v18 = vpack.c.bf16 %v641_v16, %v641_v16 }
 0xcc7   :  { %1365 = vmatmul.mubr.msk.bf16.vlgmr.msra.gmra.mrb[12].mxu1 %vm34_vm0, %v642_v18 }
 0xcc8   :  { %867 = vmatpush1.bf16.msra.mxu1 %v1641_v3  ;;  %898 = vmatprep.mubr.bf16.mxu1 %v1575_v1 }
 0xcc9   :  { %868 = vmatprep.subr.bf16.mxu1 %v1647_v4 }
 0xccc   :  { %869 = vmatpush1.bf16.msra.mxu1 %v1653_v5 }
 0xccd   :  { %870 = vmatprep.subr.bf16.mxu1 %v1658_v6 }
 0xcd0   :  { %871 = vmatpush1.bf16.msra.mxu1 %v1671_v9 }
 0xcd1   :  { %872 = vmatprep.subr.bf16.mxu1 %v1677_v10 }
 0xcd4   :  { %873 = vmatpush1.bf16.msra.mxu1 %v1689_v12 }
 0xcd5   :  { %1086 = vmatprep.subr.bf16.mxu1 %v1631_v0 }
 0xd9a   :  { %v680_v19 = vpop.f32.mrb[12].mxu1 }
 0xd9b   :  { %v681_v21 = vadd.f32 %v680_v19, %v1724_v23  ;;  %v682_v22 = vpop.f32.mrb[13].mxu1 }
 0xd9c   :  { %v683_v24 = vadd.f32 %v682_v22, %v1753_v53  ;;  %v684_v25 = vpop.f32.mrb[14].mxu1 }
 0xd9d   :  { %v688_v26 = vadd.f32 %v681_v21, %v1817_v28  ;;  %v685_v31 = vpop.f32.mrb[15].mxu1 }
 0xd9e   :  { %1539 = vtanh.f32 %v683_v24 }
 0xd9f   :  { %1541 = vtanh.f32 %v688_v26 }
 0xda8   :  { %v1540_v33 = vpop.eup %1539 }
 0xda9   :  { %v1542_v35 = vpop.eup %1541  ;;  %v725_v36 = vmul.f32 %v1540_v33, %v1727_v32 }
 0xdaa   :  { %v690_v37 = vmul.f32 %v1542_v35, %v1727_v32 }
 0xdab   :  { %v726_v0 = vadd.f32 %v725_v36, %v1729_v34 }
 0xdac   :  { %v691_v38 = vadd.f32 %v690_v37, %v1729_v34 }
 0xdad   :  { %730 = vrot.lane.b32.xlu1 %v726_v0, %s1578_s3 }
 0xdae   :  { %699 = vrot.lane.b32.xlu0 %v691_v38, %s1578_s3  ;;  %v697_v43 = vmul.f32 %v695_v39, %v691_v38 }
 0xe1f   :  { %v731_v40 = vpop.permute.xlu1 %730 }
 0xe20   :  { %v733_v28 = vmul.f32 %v731_v40, %v726_v0  ;;  %v700_v41 = vpop.permute.xlu0 %699 }
 0xe21   :  { %v702_v42 = vmul.f32 %v700_v41, %v691_v38 }
 0xe22   :  { %735 = vrot.lane.b32.xlu1 %v733_v28, %s1579_s27 }
 0xe23   :  { %704 = vrot.lane.b32.xlu0 %v702_v42, %s1579_s27 }
 0xe94   :  { %v736_v50 = vpop.permute.xlu1 %735 }
 0xe95   :  { %v705_v44 = vpop.permute.xlu0 %704 }
 0xe96   :  { %v707_v45 = vadd.f32 %v705_v44, %v697_v43 }
 0xe98   :  { %1543 = vtanh.f32 %v707_v45  ;;  %715 = vrot.lane.b32.xlu0 %v707_v45, %s1580_s28 }
 0xea2   :  { %v1544_v46 = vpop.eup %1543 }
 0xea3   :  { %710 = vrot.lane.b32.xlu0 %v1544_v46, %s1578_s3 }
 0xf0a   :  { %v716_v47 = vpop.permute.xlu0 %715 }
 0xf0b   :  { %718 = vst.msk [vmem:[#allocation3] sm:$0xff] %vm303_vm5, %v716_v47 }
 0xf12   :  { %v727_v48 = vld [vmem:[#allocation3] sm:$0xff] }
 0xf13   :  { %v728_v49 = vmul.f32 %v727_v48, %v726_v0 }
 0xf15   :  { %v738_v20 = vadd.f32 %v736_v50, %v728_v49  ;;  %v711_v51 = vpop.permute.xlu0 %710 }
 0xf16   :  { %v713_v52 = vmul.f32 %v711_v51, %v691_v38 }
 0xf17   :  { %1545 = vtanh.f32 %v738_v20  ;;  %745 = vst.msk [vmem:[#allocation3] sm:$0xff] %vm414_vm6, %v738_v20 }
 0xf18   :  { %720 = vrot.lane.b32.xlu0 %v713_v52, %s1579_s27 }
 0xf1e   :  { %v802_v17 = vld [vmem:[#allocation3] sm:$0xff] }
 0xf21   :  { %v1546_v54 = vpop.eup %1545 }
 0xf22   :  { %741 = vrot.lane.b32.xlu1 %v1546_v54, %s1578_s3 }
 0xf8a   :  { %v721_v55 = vpop.permute.xlu0 %720 }
 0xf8b   :  { %723 = vst.msk [vmem:[#allocation2] sm:$0xff] %vm303_vm5, %v721_v55 }
 0xf94   :  { %v742_v56 = vpop.permute.xlu1 %741 }
 0xf95   :  { %v744_v57 = vmul.f32 %v742_v56, %v726_v0 }
 0xf97   :  { %747 = vrot.lane.b32.xlu1 %v744_v57, %s1578_s3 }
 0xf9b   :  { %804 = vrot.lane.b32.xlu1 %v802_v17, %s1579_s27 }
0x1009   :  { %v748_v58 = vpop.permute.xlu1 %747 }
0x100a   :  { %750 = vst.msk [vmem:[#allocation2] sm:$0xff] %vm414_vm6, %v748_v58 }
0x100d   :  { %v805_v22 = vpop.permute.xlu1 %804 }
0x1011   :  { %v751_v59 = vld [vmem:[#allocation2] sm:$0xff] }
0x1012   :  { %v752_v60 = vpack.c.bf16 %v751_v59, %v751_v59 }
0x1014   :  { %1366 = vmatmul.mubr.msk.bf16.vlgmr.msra.gmra.mrb[12].mxu0 %vm34_vm0, %v752_v60 }
0x1015   :  { %977 = vmatpush1.bf16.msra.mxu0 %v1641_v3  ;;  %1008 = vmatprep.mubr.bf16.mxu0 %v1575_v1 }
0x1016   :  { %978 = vmatprep.subr.bf16.mxu0 %v1647_v4 }
0x1019   :  { %979 = vmatpush1.bf16.msra.mxu0 %v1653_v5 }
0x101a   :  { %980 = vmatprep.subr.bf16.mxu0 %v1658_v6 }
0x101d   :  { %981 = vmatpush1.bf16.msra.mxu0 %v1671_v9 }
0x101e   :  { %982 = vmatprep.subr.bf16.mxu0 %v1677_v10 }
0x1021   :  { %983 = vmatpush1.bf16.msra.mxu0 %v1689_v12 }
0x10e7   :  { %v790_v61 = vpop.f32.mrb[12].mxu0 }
0x10e8   :  { %v791_v62 = vadd.f32 %v790_v61, %v1724_v23  ;;  %v792_v63 = vpop.f32.mrb[13].mxu0 }
0x10e9   :  { %v793_v7 = vadd.f32 %v792_v63, %v1753_v53  ;;  %v794_v8 = vpop.f32.mrb[14].mxu0 }
0x10ea   :  { %v798_v11 = vadd.f32 %v791_v62, %v1821_v30  ;;  %v795_v13 = vpop.f32.mrb[15].mxu0 }
0x10eb   :  { %1547 = vtanh.f32 %v793_v7 }
0x10ec   :  { %1549 = vtanh.f32 %v798_v11 }
0x10f5   :  { %v1548_v14 = vpop.eup %1547 }
0x10f6   :  { %v1550_v15 = vpop.eup %1549  ;;  %v835_v16 = vmul.f32 %v1548_v14, %v1727_v32 }
0x10f7   :  { %v800_v18 = vmul.f32 %v1550_v15, %v1727_v32 }
0x10f8   :  { %v836_v19 = vadd.f32 %v835_v16, %v1729_v34 }
0x10f9   :  { %v801_v21 = vadd.f32 %v800_v18, %v1729_v34 }
0x10fa   :  { %840 = vrot.lane.b32.xlu1 %v836_v19, %s1578_s3 }
0x10fb   :  { %809 = vrot.lane.b32.xlu0 %v801_v21, %s1578_s3  ;;  %v807_v31 = vmul.f32 %v805_v22, %v801_v21 }
0x116c   :  { %v841_v24 = vpop.permute.xlu1 %840 }
0x116d   :  { %v843_v30 = vmul.f32 %v841_v24, %v836_v19  ;;  %v810_v25 = vpop.permute.xlu0 %809 }
0x116e   :  { %v812_v26 = vmul.f32 %v810_v25, %v801_v21 }
0x116f   :  { %845 = vrot.lane.b32.xlu1 %v843_v30, %s1579_s27 }
0x1170   :  { %814 = vrot.lane.b32.xlu0 %v812_v26, %s1579_s27 }
0x11e1   :  { %v846_v39 = vpop.permute.xlu1 %845 }
0x11e2   :  { %v815_v33 = vpop.permute.xlu0 %814 }
0x11e3   :  { %v817_v35 = vadd.f32 %v815_v33, %v807_v31 }
0x11e5   :  { %1551 = vtanh.f32 %v817_v35  ;;  %825 = vrot.lane.b32.xlu0 %v817_v35, %s1580_s28 }
0x11ef   :  { %v1552_v36 = vpop.eup %1551 }
0x11f0   :  { %820 = vrot.lane.b32.xlu0 %v1552_v36, %s1578_s3 }
0x1257   :  { %v826_v37 = vpop.permute.xlu0 %825 }
0x1258   :  { %828 = vst.msk [vmem:[#allocation3] sm:$0xff] %vm303_vm5, %v826_v37 }
0x125f   :  { %v837_v0 = vld [vmem:[#allocation3] sm:$0xff] }
0x1260   :  { %v838_v38 = vmul.f32 %v837_v0, %v836_v19 }
0x1262   :  { %v848_v40 = vadd.f32 %v846_v39, %v838_v38  ;;  %v821_v28 = vpop.permute.xlu0 %820 }
0x1263   :  { %v823_v41 = vmul.f32 %v821_v28, %v801_v21 }
0x1264   :  { %1553 = vtanh.f32 %v848_v40  ;;  %855 = vst.msk [vmem:[#allocation3] sm:$0xff] %vm414_vm6, %v848_v40 }
0x1265   :  { %830 = vrot.lane.b32.xlu0 %v823_v41, %s1579_s27 }
0x126b   :  { %v912_v46 = vld [vmem:[#allocation3] sm:$0xff] }
0x126e   :  { %v1554_v42 = vpop.eup %1553 }
0x126f   :  { %851 = vrot.lane.b32.xlu1 %v1554_v42, %s1578_s3 }
0x12d7   :  { %v831_v43 = vpop.permute.xlu0 %830 }
0x12d8   :  { %833 = vst.msk [vmem:[#allocation2] sm:$0xff] %vm303_vm5, %v831_v43 }
0x12e1   :  { %v852_v44 = vpop.permute.xlu1 %851 }
0x12e2   :  { %v854_v45 = vmul.f32 %v852_v44, %v836_v19 }
0x12e4   :  { %857 = vrot.lane.b32.xlu1 %v854_v45, %s1578_s3 }
0x12e8   :  { %914 = vrot.lane.b32.xlu1 %v912_v46, %s1579_s27 }
0x1356   :  { %v858_v47 = vpop.permute.xlu1 %857 }
0x1357   :  { %860 = vst.msk [vmem:[#allocation2] sm:$0xff] %vm414_vm6, %v858_v47 }
0x135a   :  { %v915_v55 = vpop.permute.xlu1 %914 }
0x135e   :  { %v861_v48 = vld [vmem:[#allocation2] sm:$0xff] }
0x135f   :  { %v862_v49 = vpack.c.bf16 %v861_v48, %v861_v48 }
0x1361   :  { %1367 = vmatmul.mubr.msk.bf16.vlgmr.msra.gmra.mrb[16].mxu1 %vm34_vm0, %v862_v49 }
0x1362   :  { %1087 = vmatpush1.bf16.msra.mxu1 %v1641_v3  ;;  %1118 = vmatprep.mubr.bf16.mxu1 %v1575_v1 }
0x1363   :  { %1088 = vmatprep.subr.bf16.mxu1 %v1647_v4 }
0x1366   :  { %1089 = vmatpush1.bf16.msra.mxu1 %v1653_v5 }
0x1367   :  { %1090 = vmatprep.subr.bf16.mxu1 %v1658_v6 }
0x136a   :  { %1091 = vmatpush1.bf16.msra.mxu1 %v1671_v9 }
0x136b   :  { %1092 = vmatprep.subr.bf16.mxu1 %v1677_v10 }
0x136e   :  { %1093 = vmatpush1.bf16.msra.mxu1 %v1689_v12 }
0x1434   :  { %v900_v50 = vpop.f32.mrb[16].mxu1 }
0x1435   :  { %v901_v20 = vadd.f32 %v900_v50, %v1724_v23  ;;  %v902_v51 = vpop.f32.mrb[17].mxu1 }
0x1436   :  { %v903_v3 = vadd.f32 %v902_v51, %v1753_v53  ;;  %v904_v52 = vpop.f32.mrb[18].mxu1 }
0x1437   :  { %v908_v1 = vadd.f32 %v1815_v27, %v901_v20  ;;  %v905_v4 = vpop.f32.mrb[19].mxu1 }
0x1438   :  { %1555 = vtanh.f32 %v903_v3 }
0x1439   :  { %1557 = vtanh.f32 %v908_v1 }
0x1442   :  { %v1556_v5 = vpop.eup %1555 }
0x1443   :  { %v1558_v6 = vpop.eup %1557  ;;  %v945_v9 = vmul.f32 %v1556_v5, %v1727_v32 }
0x1444   :  { %v910_v10 = vmul.f32 %v1558_v6, %v1727_v32 }
0x1445   :  { %v946_v12 = vadd.f32 %v945_v9, %v1729_v34 }
0x1446   :  { %v911_v54 = vadd.f32 %v910_v10, %v1729_v34 }
0x1447   :  { %950 = vrot.lane.b32.xlu1 %v946_v12, %s1578_s3 }
0x1448   :  { %919 = vrot.lane.b32.xlu0 %v911_v54, %s1578_s3  ;;  %v917_v58 = vmul.f32 %v915_v55, %v911_v54 }
0x14b9   :  { %v951_v56 = vpop.permute.xlu1 %950 }
0x14ba   :  { %v953_v27 = vmul.f32 %v951_v56, %v946_v12  ;;  %v920_v57 = vpop.permute.xlu0 %919 }
0x14bb   :  { %v922_v17 = vmul.f32 %v920_v57, %v911_v54 }
0x14bc   :  { %955 = vrot.lane.b32.xlu1 %v953_v27, %s1579_s27 }
0x14bd   :  { %924 = vrot.lane.b32.xlu0 %v922_v17, %s1579_s27 }
0x152e   :  { %v956_v8 = vpop.permute.xlu1 %955 }
0x152f   :  { %v925_v59 = vpop.permute.xlu0 %924 }
0x1530   :  { %v927_v60 = vadd.f32 %v925_v59, %v917_v58 }
0x1532   :  { %1559 = vtanh.f32 %v927_v60  ;;  %935 = vrot.lane.b32.xlu0 %v927_v60, %s1580_s28 }
0x153c   :  { %v1560_v61 = vpop.eup %1559 }
0x153d   :  { %930 = vrot.lane.b32.xlu0 %v1560_v61, %s1578_s3 }
0x15a4   :  { %v936_v62 = vpop.permute.xlu0 %935 }
0x15a5   :  { %938 = vst.msk [vmem:[#allocation3] sm:$0xff] %vm303_vm5, %v936_v62 }
0x15ac   :  { %v947_v63 = vld [vmem:[#allocation3] sm:$0xff] }
0x15ad   :  { %v948_v7 = vmul.f32 %v947_v63, %v946_v12 }
0x15af   :  { %v958_v11 = vadd.f32 %v956_v8, %v948_v7  ;;  %v931_v13 = vpop.permute.xlu0 %930 }
0x15b0   :  { %v933_v14 = vmul.f32 %v931_v13, %v911_v54 }
0x15b1   :  { %1561 = vtanh.f32 %v958_v11  ;;  %965 = vst.msk [vmem:[#allocation3] sm:$0xff] %vm414_vm6, %v958_v11 }
0x15b2   :  { %940 = vrot.lane.b32.xlu0 %v933_v14, %s1579_s27  ;;  %v1581_v14 = vmov 0.0|0.0  }
0x15b3   :  { %1456 = vmatprep.subr.bf16.mxu0 %v1581_v14 }
0x15b8   :  { %v1022_v21 = vld [vmem:[#allocation3] sm:$0xff] }
0x15bb   :  { %v1562_v15 = vpop.eup %1561 }
0x15bc   :  { %961 = vrot.lane.b32.xlu1 %v1562_v15, %s1578_s3  ;;  %v1159_v15 = vld [vmem:[%s2056_s4 + $0x8] sm:$0xff] }
0x1624   :  { %v941_v16 = vpop.permute.xlu0 %940 }
0x1625   :  { %943 = vst.msk [vmem:[#allocation2] sm:$0xff] %vm303_vm5, %v941_v16  ;;  %v1160_v16 = vld [vmem:[%s2056_s4 + $0x10] sm:$0xff] }
0x162e   :  { %v962_v18 = vpop.permute.xlu1 %961 }
0x162f   :  { %v964_v19 = vmul.f32 %v962_v18, %v946_v12 }
0x1631   :  { %967 = vrot.lane.b32.xlu1 %v964_v19, %s1578_s3  ;;  %v1161_v19 = vld [vmem:[%s2056_s4 + $0x18] sm:$0xff] }
0x1635   :  { %1024 = vrot.lane.b32.xlu1 %v1022_v21, %s1579_s27  ;;  %v1460_v21 = vpack.c.bf16 %v1161_v19, %v1160_v16 }
0x16a3   :  { %v968_v22 = vpop.permute.xlu1 %967 }
0x16a4   :  { %970 = vst.msk [vmem:[#allocation2] sm:$0xff] %vm414_vm6, %v968_v22 }
0x16ab   :  { %v971_v24 = vld [vmem:[#allocation2] sm:$0xff] }
0x16ac   :  { %v972_v30 = vpack.c.bf16 %v971_v24, %v971_v24 }
0x16ae   :  { %1368 = vmatmul.mubr.msk.bf16.vlgmr.msra.gmra.mrb[16].mxu0 %vm34_vm0, %v972_v30 }
0x16af   :  { %1418 = vmatprep.mubr.msk.f32.mxu0 %vm1582_vm7, %v1576_v2 }
0x1781   :  { %v1010_v25 = vpop.f32.mrb[16].mxu0 }
0x1782   :  { %v1011_v26 = vadd.f32 %v1010_v25, %v1724_v23  ;;  %v1012_v31 = vpop.f32.mrb[17].mxu0  ;;  %v1025_v23 = vpop.permute.xlu1 %1024  ;;  %v1245_v25 = vld [vmem:[%s2057_s6] sm:$0xff] }
0x1783   :  { %v1013_v33 = vadd.f32 %v1012_v31, %v1753_v53  ;;  %v1014_v35 = vpop.f32.mrb[18].mxu0 }
0x1784   :  { %v1018_v36 = vadd.f32 %v1819_v29, %v1011_v26  ;;  %v1015_v37 = vpop.f32.mrb[19].mxu0  ;;  %v1246_v26 = vld [vmem:[%s2057_s6 + $0x8] sm:$0xff]  ;;  %v1248_v35 = vld [vmem:[%s2057_s6 + $0x18] sm:$0xff] }
0x1785   :  { %1563 = vtanh.f32 %v1013_v33  ;;  %v1463_v31 = vpack.c.bf16 %v1246_v26, %v1245_v25  ;;  %v1247_v33 = vld [vmem:[%s2057_s6 + $0x10] sm:$0xff] }
0x1786   :  { %1565 = vtanh.f32 %v1018_v36  ;;  %v1466_v37 = vpack.c.bf16 %v1248_v35, %v1247_v33 }
0x178f   :  { %v1564_v0 = vpop.eup %1563 }
0x1790   :  { %v1566_v38 = vpop.eup %1565  ;;  %v1055_v39 = vmul.f32 %v1564_v0, %v1727_v32  ;;  %v1249_v0 = vld [vmem:[%s2057_s6 + $0x20] sm:$0xff] }
0x1791   :  { %v1020_v40 = vmul.f32 %v1566_v38, %v1727_v32  ;;  %v1250_v38 = vld [vmem:[%s2057_s6 + $0x28] sm:$0xff] }
0x1792   :  { %v1056_v28 = vadd.f32 %v1055_v39, %v1729_v34  ;;  %v1469_v39 = vpack.c.bf16 %v1250_v38, %v1249_v0 }
0x1793   :  { %v1021_v41 = vadd.f32 %v1020_v40, %v1729_v34  ;;  %v1251_v40 = vld [vmem:[%s2057_s6 + $0x30] sm:$0xff] }
0x1794   :  { %1060 = vrot.lane.b32.xlu1 %v1056_v28, %s1578_s3 }
0x1795   :  { %1029 = vrot.lane.b32.xlu0 %v1021_v41, %s1578_s3  ;;  %v1027_v45 = vmul.f32 %v1025_v23, %v1021_v41  ;;  %v1254_v23 = vld [vmem:[%s2057_s6 + $0x48] sm:$0xff] }
0x1806   :  { %v1061_v42 = vpop.permute.xlu1 %1060 }
0x1807   :  { %v1063_v29 = vmul.f32 %v1061_v42, %v1056_v28  ;;  %v1030_v43 = vpop.permute.xlu0 %1029 }
0x1808   :  { %v1032_v44 = vmul.f32 %v1030_v43, %v1021_v41  ;;  %v1256_v43 = vld [vmem:[%s2057_s6 + $0x58] sm:$0xff] }
0x1809   :  { %1065 = vrot.lane.b32.xlu1 %v1063_v29, %s1579_s27  ;;  %v1255_v29 = vld [vmem:[%s2057_s6 + $0x50] sm:$0xff] }
0x180a   :  { %1034 = vrot.lane.b32.xlu0 %v1032_v44, %s1579_s27  ;;  %v1478_v44 = vpack.c.bf16 %v1256_v43, %v1255_v29 }
0x187b   :  { %v1066_v51 = vpop.permute.xlu1 %1065 }
0x187c   :  { %v1035_v46 = vpop.permute.xlu0 %1034 }
0x187d   :  { %v1037_v47 = vadd.f32 %v1035_v46, %v1027_v45  ;;  %v1257_v45 = vld [vmem:[%s2057_s6 + $0x60] sm:$0xff]  ;;  %v1258_v46 = vld [vmem:[%s2057_s6 + $0x68] sm:$0xff] }
0x187f   :  { %1567 = vtanh.f32 %v1037_v47  ;;  %1045 = vrot.lane.b32.xlu0 %v1037_v47, %s1580_s28  ;;  %v1481_v47 = vpack.c.bf16 %v1258_v46, %v1257_v45 }
0x1889   :  { %v1568_v48 = vpop.eup %1567 }
0x188a   :  { %1040 = vrot.lane.b32.xlu0 %v1568_v48, %s1578_s3  ;;  %v1259_v48 = vld [vmem:[%s2057_s6 + $0x70] sm:$0xff] }
0x18f1   :  { %v1046_v49 = vpop.permute.xlu0 %1045 }
0x18f2   :  { %1048 = vst.msk [vmem:[#allocation3] sm:$0xff] %vm303_vm5, %v1046_v49  ;;  %v1260_v49 = vld [vmem:[%s2057_s6 + $0x78] sm:$0xff] }
0x18f9   :  { %v1057_v50 = vld [vmem:[#allocation3] sm:$0xff] }
0x18fa   :  { %v1058_v20 = vmul.f32 %v1057_v50, %v1056_v28  ;;  %v1484_v50 = vpack.c.bf16 %v1260_v49, %v1259_v48 }
0x18fc   :  { %v1068_v3 = vadd.f32 %v1066_v51, %v1058_v20  ;;  %v1041_v52 = vpop.permute.xlu0 %1040  ;;  %v1370_v20 = vld [vmem:[%s2058_s5] ss:$0 sm:$0xff] }
0x18fd   :  { %v1043_v1 = vmul.f32 %v1041_v52, %v1021_v41  ;;  %v1253_v41 = vld [vmem:[%s2057_s6 + $0x40] sm:$0xff] }
0x18fe   :  { %1569 = vtanh.f32 %v1068_v3  ;;  %1075 = vst.msk [vmem:[#allocation3] sm:$0xff] %vm414_vm6, %v1068_v3  ;;  %v1475_v42 = vpack.c.bf16 %v1254_v23, %v1253_v41 }
0x18ff   :  { %1050 = vrot.lane.b32.xlu0 %v1043_v1, %s1579_s27 }
0x1905   :  { %v1129_v63 = vld [vmem:[#allocation3] sm:$0xff] }
0x1908   :  { %v1570_v4 = vpop.eup %1569 }
0x1909   :  { %1071 = vrot.lane.b32.xlu1 %v1570_v4, %s1578_s3  ;;  %v1372_v4 = vld [vmem:[%s2059_s7] ss:$0 sm:$0xff] }
0x1971   :  { %v1051_v5 = vpop.permute.xlu0 %1050 }
0x1972   :  { %1053 = vst.msk [vmem:[#allocation2] sm:$0xff] %vm303_vm5, %v1051_v5 }
0x197b   :  { %v1072_v6 = vpop.permute.xlu1 %1071 }
0x197c   :  { %v1074_v9 = vmul.f32 %v1072_v6, %v1056_v28 }
0x197e   :  { %1077 = vrot.lane.b32.xlu1 %v1074_v9, %s1578_s3 }
0x19f0   :  { %v1078_v10 = vpop.permute.xlu1 %1077 }
0x19f1   :  { %1080 = vst.msk [vmem:[#allocation2] sm:$0xff] %vm414_vm6, %v1078_v10 }
0x19f8   :  { %v1081_v12 = vld [vmem:[#allocation2] sm:$0xff] }
0x19f9   :  { %v1082_v54 = vpack.c.bf16 %v1081_v12, %v1081_v12 }
0x19fb   :  { %1369 = vmatmul.mubr.msk.bf16.vlgmr.msra.gmra.mrb[20].mxu1 %vm34_vm0, %v1082_v54 }
0x1ace   :  { %v1120_v55 = vpop.f32.mrb[20].mxu1 }
0x1acf   :  { %v1121_v56 = vpop.f32.mrb[21].mxu1 }
0x1ad0   :  { %v1122_v27 = vadd.f32 %v1121_v56, %v1753_v53  ;;  %v1123_v57 = vpop.f32.mrb[22].mxu1 }
0x1ad1   :  { %v1124_v17 = vpop.f32.mrb[23].mxu1 }
0x1ad2   :  { %1571 = vtanh.f32 %v1122_v27 }
0x1adc   :  { %v1572_v58 = vpop.eup %1571 }
0x1add   :  { %v1127_v59 = vmul.f32 %v1572_v58, %v1727_v32 }
0x1adf   :  { %v1128_v60 = vadd.f32 %v1127_v59, %v1729_v34  ;;  %v1158_v34 = vld [vmem:[%s2056_s4] sm:$0xff] }
0x1ae0   :  { %v1457_v18 = vpack.c.bf16 %v1159_v15, %v1158_v34 }
0x1ae1   :  { %1132 = vrot.lane.b32.xlu0 %v1128_v60, %s1578_s3  ;;  %v1130_v7 = vmul.f32 %v1129_v63, %v1128_v60 }
0x1ae2   :  { %1458 = vmatpush3.bf16.msra.mxu0 %v1457_v18 }
0x1ae3   :  { %1459 = vmatprep.subr.bf16.mxu0 %v1581_v14 }
0x1ae6   :  { %1461 = vmatpush3.bf16.msra.mxu0 %v1460_v21 }
0x1ae7   :  { %1462 = vmatprep.subr.bf16.mxu0 %v1581_v14 }
0x1b53   :  { %v1133_v61 = vpop.permute.xlu0 %1132 }
0x1b54   :  { %v1135_v62 = vmul.f32 %v1133_v61, %v1128_v60 }
0x1b56   :  { %1137 = vrot.lane.b32.xlu1 %v1135_v62, %s1579_s27 }
0x1bc8   :  { %v1138_v8 = vpop.permute.xlu1 %1137 }
0x1bc9   :  { %v1140_v11 = vadd.f32 %v1138_v8, %v1130_v7 }
0x1bcb   :  { %1573 = vtanh.f32 %v1140_v11  ;;  %1147 = vst.msk [vmem:[#allocation3] sm:$0xff] %vm414_vm6, %v1140_v11 }
0x1bd5   :  { %v1574_v53 = vpop.eup %1573 }
0x1bd6   :  { %1143 = vrot.lane.b32.xlu0 %v1574_v53, %s1578_s3 }
0x1c48   :  { %v1144_v13 = vpop.permute.xlu0 %1143 }
0x1c49   :  { %v1146_v32 = vmul.f32 %v1144_v13, %v1128_v60 }
0x1c4b   :  { %1149 = vrot.lane.b32.xlu1 %v1146_v32, %s1578_s3 }
0x1cbd   :  { %v1150_v22 = vpop.permute.xlu1 %1149 }
0x1cbe   :  { %1152 = vst.msk [vmem:[#allocation2] sm:$0xff] %vm414_vm6, %v1150_v22 }
0x1cc5   :  { %v1156_v24 = vld [vmem:[#allocation2] sm:$0xff] }
0x1cc6   :  { %v1157_v30 = vmax.f32 %v1156_v24, 0.0 }
0x1cc8   :  { %1170 = vrot.lane.b32.xlu0 %v1157_v30, %s1580_s28 }
0x1d3a   :  { %v1171_v36 = vpop.permute.xlu0 %1170 }
0x1d3b   :  { %1419 = vmatmul.mubr.msk.f32.vlgmr.msra.gmra.mrb[20].mxu0 %vm303_vm5, %v1171_v36 }
0x1d3c   :  { %1464 = vmatpush3.bf16.msra.mxu0 %v1463_v31  ;;  %1453 = vmatprep.mubr.msk.f32.mxu0 %vm1582_vm7, %v1576_v2  ;;  %v1252_v2 = vld [vmem:[%s2057_s6 + $0x38] sm:$0xff] }
0x1d3d   :  { %1465 = vmatprep.subr.bf16.mxu0 %v1581_v14  ;;  %v1472_v28 = vpack.c.bf16 %v1252_v2, %v1251_v40 }
0x1d40   :  { %1467 = vmatpush3.bf16.msra.mxu0 %v1466_v37 }
0x1d41   :  { %1468 = vmatprep.subr.bf16.mxu0 %v1581_v14 }
0x1d44   :  { %1470 = vmatpush3.bf16.msra.mxu0 %v1469_v39 }
0x1d45   :  { %1471 = vmatprep.subr.bf16.mxu0 %v1581_v14 }
0x1d48   :  { %1473 = vmatpush3.bf16.msra.mxu0 %v1472_v28 }
0x1d49   :  { %1474 = vmatprep.subr.bf16.mxu0 %v1581_v14 }
0x1d4c   :  { %1476 = vmatpush3.bf16.msra.mxu0 %v1475_v42 }
0x1d4d   :  { %1477 = vmatprep.subr.bf16.mxu0 %v1581_v14 }
0x1d50   :  { %1479 = vmatpush3.bf16.msra.mxu0 %v1478_v44 }
0x1d51   :  { %1480 = vmatprep.subr.bf16.mxu0 %v1581_v14 }
0x1d54   :  { %1482 = vmatpush3.bf16.msra.mxu0 %v1481_v47 }
0x1d55   :  { %1483 = vmatprep.subr.bf16.mxu0 %v1581_v14 }
0x1d58   :  { %1485 = vmatpush3.bf16.msra.mxu0 %v1484_v50 }
0x1e0e   :  { %v1240_v51 = vpop.f32.mrb[20].mxu0 }
0x1e0f   :  { %v1241_v3 = vadd.f32 %v1370_v20, %v1240_v51  ;;  %v1420_v52 = vpop.f32.mrb[21].mxu0 }
0x1e11   :  { %v1244_v1 = vmax.f32 %v1241_v3, 0.0 }
0x1e13   :  { %1454 = vmatmul.mubr.f32.vlgmr.msra.gmra.mrb[22].mxu0 %v1244_v1 }
0x1ee6   :  { %v1334_v5 = vpop.f32.mrb[22].mxu0 }
0x1ee7   :  { %v1335_v6 = vadd.f32 %v1372_v4, %v1334_v5  ;;  %v1455_v9 = vpop.f32.mrb[23].mxu0 }
0x1ee9   :  { %1339 = vst.msk [vmem:[%s2060_s8] sm:$0xff] %vm1338_vm8, %v1335_v6 }

</bundles_post_ra>
